<compile_context>
chip_gen: v7x
topology: tpu7x:2x2x1
jax: 0.10.0
libtpu: 0.0.40
codegen_flags: <defaults>
</compile_context>

<pallas_src>
import jax
import jax.numpy as jnp
from jax.experimental import pallas as pl
from jax.experimental.pallas import tpu as pltpu


# ----------------------------------------------------------------------------
# BitNet b1.58 quantizers (glue / reference)
# ----------------------------------------------------------------------------
def _weight_quant_int(w):
    """Per-tensor absmean ternary quant. Returns (codes in {-1,0,+1}, scale)."""
    s = jnp.clip(jnp.mean(jnp.abs(w)), 1e-5, None)
    w_int = jnp.round(jnp.clip(w / s, -1.0, 1.0))
    return w_int, s


def _act_quant_ref(x):
    """Per-token absmax int8 fake-quant (canonical divide-back form, reference)."""
    amax = jnp.clip(jnp.max(jnp.abs(x), axis=-1, keepdims=True), 1e-5, None)
    s = 127.0 / amax
    return jnp.round(jnp.clip(x * s, -128.0, 127.0)) / s


# ----------------------------------------------------------------------------
# Hardware-aware tiling helpers
# ----------------------------------------------------------------------------
def _vmem_capacity_bytes():
    try:
        return int(pltpu.get_tpu_info().vmem_capacity_bytes)
    except Exception:
        return 128 << 20  # v5e/v6e default


def _round_up(x, m):
    return ((x + m - 1) // m) * m


def _select_ti(I, vmem_cap=None):
    """Intermediate-dim tile: prefer 512 (256 on small-VMEM chips), fall back."""
    if vmem_cap is None:
        vmem_cap = _vmem_capacity_bytes()
    prefer = 256 if vmem_cap <= (64 << 20) else 512
    for cand in (prefer, 512, 256, 128):
        if cand <= I and I % cand == 0:
            return cand
    return I  # fully-resident weights (small models only)


def _vmem_estimate(tm, ti, n_j, H, out_itemsize):
    return (
        2 * tm * H * 2                 # x tiles (bf16, double buffered)
        + 2 * H * (2 * ti) * 1         # fused gate|up weight tiles (int8)
        + 2 * ti * H * 1               # down weight tiles (int8)
        + 2 * tm * H * out_itemsize    # output tiles
        + tm * H * 2                   # xq integer codes (bf16)
        + 2 * tm * 128 * 4             # per-token scale + running |h| max (lane padded)
        + n_j * tm * ti * 2            # stashed h tiles (bf16)
        + tm * H * 4                   # f32 down-proj accumulator
    )


def _select_tm(T, H, ti, n_j, out_itemsize, vmem_cap):
    two_tc = vmem_cap <= (64 << 20)    # v7x-like chip: 2 TensorCores, 64 MiB/TC
    tm_cap = _round_up(max(T, 1), 8)
    if two_tc and T > 8:
        # Give the "parallel" token axis >= 2 entries so both TCs are used.
        tm_cap = min(tm_cap, max(8, _round_up(pl.cdiv(T, 2), 8)))
    budget = int(vmem_cap * 0.7)
    cands = [512, 256, 128, 64, 32, 16, 8]
    if two_tc:
        cands = [c for c in cands if c <= 256]
    cands = sorted({min(c, tm_cap) for c in cands}, reverse=True)
    for tm in cands:
        if _vmem_estimate(tm, ti, n_j, H, out_itemsize) <= budget:
            return tm
    return cands[-1]


# ----------------------------------------------------------------------------
# Kernel
# ----------------------------------------------------------------------------
def _make_mlp_bitnet_kernel(n_j, ti):
    """n_j = number of intermediate-dim tiles, ti = tile width (Python ints)."""

    def kernel(scales_ref, x_ref, wgu_ref, wd_ref, o_ref,
               xq_s, scl_s, hmax_s, h_s, acc_s):
        # scales_ref: (2,) f32 SMEM -> [s_gate_up, s_down] per-tensor weight scales
        # x_ref:   (tm, H)      bf16 token tile
        # wgu_ref: (H, 2*ti)    int8 ternary codes, gate|up interleaved per I-tile
        # wd_ref:  (ti, H)      int8 ternary codes, down_proj, I-tile j
        # o_ref:   (tm, H)      output tile
        # xq_s:    (tm, H)      bf16 int8-valued activation codes of x
        # scl_s:   (tm, 1)      f32  phase 0: gate/up dequant scale; phase 1: h quant scale
        # hmax_s:  (tm, 1)      f32  running per-token max|h|
        # h_s:     (n_j,tm,ti)  bf16 stashed h tiles
        # acc_s:   (tm, H)      f32  down-proj accumulator
        jj = pl.program_id(1)          # 0 .. 2*n_j-1  (phase 0 then phase 1)

        # ---- once per token tile: per-token absmax int8 fake-quant of x ----
        @pl.when(jj == 0)
        def _():
            x = x_ref[...].astype(jnp.float32)
            amax = jnp.maximum(jnp.max(jnp.abs(x), axis=-1, keepdims=True), 1e-5)
            # |x|*127/amax <= 127 by construction -> reference clip is a no-op.
            xq_s[...] = jnp.round(x * (127.0 / amax)).astype(jnp.bfloat16)
            # Factored dequant scale for gate/up (hoisted out of phase 0).
            scl_s[...] = amax * (scales_ref[0] / 127.0)
            hmax_s[...] = jnp.zeros_like(hmax_s)

        # ---- phase 0: fused gate|up matmul on I-tile jj, SiLU*up, stash h ---
        @pl.when(jj < n_j)
        def _():
            w = wgu_ref[...].astype(jnp.bfloat16)       # ternary codes {-1,0,1}
            gu = jnp.dot(xq_s[...], w, preferred_element_type=jnp.float32)
            gu = gu * scl_s[...]
            h = (jax.nn.silu(gu[:, :ti]) * gu[:, ti:]).astype(jnp.bfloat16)
            h_s[jj] = h
            hmax_s[...] = jnp.maximum(
                hmax_s[...],
                jnp.max(jnp.abs(h), axis=-1, keepdims=True).astype(jnp.float32))

        # ---- phase-1 prologue: zero accumulator, freeze the h quant scale ---
        @pl.when(jj == n_j)
        def _():
            acc_s[...] = jnp.zeros_like(acc_s)
            scl_s[...] = 127.0 / jnp.maximum(hmax_s[...], 1e-5)

        # ---- phase 1: quantize stashed h tile with GLOBAL absmax, matmul ----
        @pl.when(jj >= n_j)
        def _():
            j = jj - n_j
            hq = jnp.round(h_s[j].astype(jnp.float32) * scl_s[...]).astype(jnp.bfloat16)
            wd = wd_ref[...].astype(jnp.bfloat16)
            acc_s[...] += jnp.dot(hq, wd, preferred_element_type=jnp.float32)

        # ---- epilogue: apply the factored output scales, write the tile -----
        @pl.when(jj == 2 * n_j - 1)
        def _():
            out_scale = jnp.maximum(hmax_s[...], 1e-5) * (scales_ref[1] / 127.0)
            o_ref[...] = (acc_s[...] * out_scale).astype(o_ref.dtype)

    return kernel


# ----------------------------------------------------------------------------
# Weight preparation (one-time; cache the result)
# ----------------------------------------------------------------------------
def prepare_bitnet_weights(w_gate_up, w_down, *, ti=None):
    """w_gate_up: (2*I, H) PyTorch layout (gate rows first); w_down: (H, I).

    Returns int8 ternary codes in [in, out] layout, with gate/up interleaved at
    I-tile granularity so a single (H, 2*ti) block carries matched tiles.
    """
    two_i, H = w_gate_up.shape
    I = two_i // 2
    assert two_i == 2 * I and w_down.shape == (H, I)
    if ti is None:
        ti = _select_ti(I)
    assert ti == I or (I % ti == 0 and ti % 128 == 0)
    n_j = I // ti

    wgu_i, s_gu = _weight_quant_int(w_gate_up.astype(jnp.float32))
    wd_i, s_d = _weight_quant_int(w_down.astype(jnp.float32))

    wg = wgu_i[:I].T                                   # (H, I) gate codes
    wu = wgu_i[I:].T                                   # (H, I) up codes
    w_cat = jnp.concatenate(
        [wg.reshape(H, n_j, ti), wu.reshape(H, n_j, ti)], axis=-1
    ).reshape(H, 2 * I)                                # tile-interleaved gate|up

    return {
        "w_gate_up": w_cat.astype(jnp.int8),           # (H, 2*I) int8 codes
        "w_down": wd_i.T.astype(jnp.int8),             # (I, H)   int8 codes
        "scales": jnp.stack([s_gu, s_d]).astype(jnp.float32),   # (2,)
        "ti": int(ti),
    }


# ----------------------------------------------------------------------------
# Wrapper
# ----------------------------------------------------------------------------
def mlp_bitnet(hidden_states, params, *, tm=None, interpret=False):
    """hidden_states: [seq, batch, hidden] (nanotron layout)."""
    S, B, H = hidden_states.shape
    w_gu, w_d = params["w_gate_up"], params["w_down"]
    scales, ti = params["scales"], int(params["ti"])
    I = w_d.shape[0]
    assert w_gu.shape == (H, 2 * I) and w_d.shape == (I, H)
    assert I % ti == 0
    n_j = I // ti
    # bf16 integer-code matmuls are exact only while partial sums stay < 2^24.
    assert 127 * max(H, I) < (1 << 24), "contraction too long for exact bf16 codes"

    out_dtype = hidden_states.dtype
    # Stream activations as bf16 (halves x DMA/VMEM); kernel upcasts to f32.
    x2d = hidden_states.reshape(S * B, H).astype(jnp.bfloat16)
    T = S * B

    vmem_cap = _vmem_capacity_bytes()
    out_isz = jnp.dtype(out_dtype).itemsize
    if tm is None:
        tm = _select_tm(T, H, ti, n_j, out_isz, vmem_cap)
    assert tm % 8 == 0

    n_t = pl.cdiv(T, tm)
    Tp = n_t * tm
    if Tp != T:  # zero rows quantize to zero and are sliced off afterwards
        x2d = jnp.pad(x2d, ((0, Tp - T), (0, 0)))

    est = _vmem_estimate(tm, ti, n_j, H, out_isz)
    vmem_limit = int(min(max(int(est * 1.25) + (2 << 20), 32 << 20),
                         int(vmem_cap * 0.9)))

    kernel = _make_mlp_bitnet_kernel(n_j, ti)

    out2d = pl.pallas_call(
        kernel,
        out_shape=jax.ShapeDtypeStruct((Tp, H), out_dtype),
        grid_spec=pltpu.PrefetchScalarGridSpec(
            num_scalar_prefetch=0,
            grid=(n_t, 2 * n_j),
            in_specs=[
                # per-tensor weight scales -> SMEM scalars
                pl.BlockSpec(memory_space=pltpu.MemorySpace.SMEM),
                # token tile of x (block index constant across jj -> one fetch per i)
                pl.BlockSpec((tm, H), lambda i, jj: (i, 0)),
                # fused gate|up int8 tiles: walk j in phase 0, park during phase 1
                pl.BlockSpec((H, 2 * ti), lambda i, jj: (0, jnp.minimum(jj, n_j - 1))),
                # down int8 tiles: park at 0 during phase 0, walk in phase 1
                pl.BlockSpec((ti, H), lambda i, jj: (jnp.maximum(jj - n_j, 0), 0)),
            ],
            out_specs=pl.BlockSpec((tm, H), lambda i, jj: (i, 0)),
            scratch_shapes=[
                pltpu.VMEM((tm, H), jnp.bfloat16),        # xq integer codes
                pltpu.VMEM((tm, 1), jnp.float32),         # dequant / h-quant scale
                pltpu.VMEM((tm, 1), jnp.float32),         # running |h| max
                pltpu.VMEM((n_j, tm, ti), jnp.bfloat16),  # stashed h tiles
                pltpu.VMEM((tm, H), jnp.float32),         # down-proj accumulator
            ],
        ),
        compiler_params=pltpu.CompilerParams(
            dimension_semantics=("parallel", "arbitrary"),
            vmem_limit_bytes=vmem_limit,
        ),
        interpret=interpret,
    )(scales, x2d, w_gu, w_d)

    return {"hidden_states": out2d[:T].reshape(S, B, H)}


# ----------------------------------------------------------------------------
# Pure-JAX reference (canonical BitLinear divide-back fake-quant)
# ----------------------------------------------------------------------------
def _reference(hidden_states, w_gate_up, w_down):
    x = hidden_states.astype(jnp.float32)
    wgu_i, s_gu = _weight_quant_int(w_gate_up.astype(jnp.float32))
    wd_i, s_d = _weight_quant_int(w_down.astype(jnp.float32))
    merged = _act_quant_ref(x) @ (wgu_i * s_gu).T
    inter = merged.shape[-1] // 2
    h = jax.nn.silu(merged[..., :inter]) * merged[..., inter:]
    out = _act_quant_ref(h) @ (wd_i * s_d).T
    return out.astype(hidden_states.dtype)


if __name__ == "__main__":
    seq, batch, hidden, intermediate = 8, 2, 256, 512

    key = jax.random.PRNGKey(0)
    kx, kg, kd = jax.random.split(key, 3)
    # bf16 hidden states (realistic for BitNet training; halves activation DMA)
    x = jax.random.normal(kx, (seq, batch, hidden), dtype=jnp.float32).astype(jnp.bfloat16)
    # PyTorch nn.Linear weight layout: (out_features, in_features)
    w_gate_up = 0.05 * jax.random.normal(kg, (2 * intermediate, hidden), dtype=jnp.float32)
    w_down = 0.05 * jax.random.normal(kd, (hidden, intermediate), dtype=jnp.float32)

    params = prepare_bitnet_weights(w_gate_up, w_down)   # one-time weight prep
    out = mlp_bitnet(x, params)["hidden_states"]
    jax.block_until_ready(out)

    ref = _reference(x, w_gate_up, w_down)
    assert out.shape == (seq, batch, hidden)
    of32, rf32 = out.astype(jnp.float32), ref.astype(jnp.float32)
    max_err = float(jnp.max(jnp.abs(of32 - rf32)))
    assert jnp.allclose(of32, rf32, atol=3e-2, rtol=3e-2), f"mismatch, max_err={max_err}"

    print("KERNEL_OK")
</pallas_src>

<mosaic_0001>
module attributes {stable_mosaic.version = 11 : i64} {
  func.func @kernel(%arg0: i32, %arg1: i32, %arg2: memref<2xf32, #tpu.memory_space<smem>>, %arg3: memref<16x256xbf16, #tpu.memory_space<vmem>>, %arg4: memref<256x1024xi8, #tpu.memory_space<vmem>>, %arg5: memref<512x256xi8, #tpu.memory_space<vmem>>, %arg6: memref<16x256xbf16, #tpu.memory_space<vmem>>, %arg7: memref<16x256xbf16, #tpu.memory_space<vmem>>, %arg8: memref<16x1xf32, #tpu.memory_space<vmem>>, %arg9: memref<16x1xf32, #tpu.memory_space<vmem>>, %arg10: memref<1x16x512xbf16, #tpu.memory_space<vmem>>, %arg11: memref<16x256xf32, #tpu.memory_space<vmem>>) attributes {dimension_semantics = [#tpu.dimension_semantics<parallel>, #tpu.dimension_semantics<arbitrary>], iteration_bounds = array<i64: 1, 2>, scalar_prefetch = 0 : i64, scratch_operands = 5 : i64, tpu.core_type = #tpu.core_type<tc>, window_params = [{transform_indices = @transform_0, window_bounds = array<i64: 2>}, {transform_indices = @transform_1, window_bounds = array<i64: 16, 256>}, {transform_indices = @transform_2, window_bounds = array<i64: 256, 1024>}, {transform_indices = @transform_3, window_bounds = array<i64: 512, 256>}, {transform_indices = @transform_4, window_bounds = array<i64: 16, 256>}]} {
    %c0_i32 = arith.constant 0 : i32
    %0 = arith.cmpi eq, %arg1, %c0_i32 : i32
    %1 = arith.extui %0 : i1 to i32
    %c0_i32_0 = arith.constant 0 : i32
    %2 = arith.cmpi ne, %1, %c0_i32_0 : i32
    scf.if %2 {
      %c0 = arith.constant 0 : index
      %c0_8 = arith.constant 0 : index
      %15 = vector.load %arg3[%c0, %c0_8] : memref<16x256xbf16, #tpu.memory_space<vmem>>, vector<16x256xbf16>
      %16 = arith.extf %15 : vector<16x256xbf16> to vector<16x256xf32>
      %17 = math.absf %16 : vector<16x256xf32>
      %cst = arith.constant dense<0xFF800000> : vector<16xf32>
      %18 = vector.multi_reduction <maximumf>, %17, %cst [1] : vector<16x256xf32> to vector<16xf32>
      %19 = vector.shape_cast %18 : vector<16xf32> to vector<16x1xf32>
      %cst_9 = arith.constant 9.99999974E-6 : f32
      %20 = vector.broadcast %cst_9 : f32 to vector<16x1xf32>
      %21 = arith.maximumf %19, %20 : vector<16x1xf32>
      %cst_10 = arith.constant 1.270000e+02 : f32
      %22 = vector.broadcast %cst_10 : f32 to vector<16x1xf32>
      %23 = arith.divf %22, %21 : vector<16x1xf32>
      %24 = vector.broadcast %23 : vector<16x1xf32> to vector<16x256xf32>
      %25 = arith.mulf %16, %24 : vector<16x256xf32>
      %26 = math.roundeven %25 : vector<16x256xf32>
      %27 = arith.truncf %26 : vector<16x256xf32> to vector<16x256xbf16>
      %c0_11 = arith.constant 0 : index
      %c0_12 = arith.constant 0 : index
      %28 = vector.load %arg7[%c0_11, %c0_12] : memref<16x256xbf16, #tpu.memory_space<vmem>>, vector<16x256xbf16>
      tpu.vector_store %arg7[%c0_11, %c0_12], %27 {strides = array<i32>} : memref<16x256xbf16, #tpu.memory_space<vmem>>, vector<16x256xbf16>,
      %c0_13 = arith.constant 0 : index
      %29 = memref.load %arg2[%c0_13] : memref<2xf32, #tpu.memory_space<smem>>
      %cst_14 = arith.constant 1.270000e+02 : f32
      %30 = arith.divf %29, %cst_14 : f32
      %31 = vector.broadcast %30 : f32 to vector<16x1xf32>
      %32 = arith.mulf %21, %31 : vector<16x1xf32>
      %c0_15 = arith.constant 0 : index
      %c0_16 = arith.constant 0 : index
      %33 = vector.load %arg8[%c0_15, %c0_16] : memref<16x1xf32, #tpu.memory_space<vmem>>, vector<16x1xf32>
      tpu.vector_store %arg8[%c0_15, %c0_16], %32 {strides = array<i32>} : memref<16x1xf32, #tpu.memory_space<vmem>>, vector<16x1xf32>,
      %cst_17 = arith.constant 0.000000e+00 : f32
      %34 = vector.broadcast %cst_17 : f32 to vector<16x1xf32>
      %c0_18 = arith.constant 0 : index
      %c0_19 = arith.constant 0 : index
      %35 = vector.load %arg9[%c0_18, %c0_19] : memref<16x1xf32, #tpu.memory_space<vmem>>, vector<16x1xf32>
      tpu.vector_store %arg9[%c0_18, %c0_19], %34 {strides = array<i32>} : memref<16x1xf32, #tpu.memory_space<vmem>>, vector<16x1xf32>,
    } else {
    }
    %c1_i32 = arith.constant 1 : i32
    %3 = arith.cmpi slt, %arg1, %c1_i32 : i32
    %4 = arith.extui %3 : i1 to i32
    %c0_i32_1 = arith.constant 0 : i32
    %5 = arith.cmpi ne, %4, %c0_i32_1 : i32
    scf.if %5 {
      %c0 = arith.constant 0 : index
      %c0_8 = arith.constant 0 : index
      %15 = vector.load %arg4[%c0, %c0_8] : memref<256x1024xi8, #tpu.memory_space<vmem>>, vector<256x1024xi8>
      %16 = arith.sitofp %15 : vector<256x1024xi8> to vector<256x1024xbf16>
      %c0_9 = arith.constant 0 : index
      %c0_10 = arith.constant 0 : index
      %17 = vector.load %arg7[%c0_9, %c0_10] : memref<16x256xbf16, #tpu.memory_space<vmem>>, vector<16x256xbf16>
      %cst = arith.constant dense<0.000000e+00> : vector<16x1024xf32>
      %18 = tpu.matmul %17, %16, %cst {dimension_numbers = #tpu.dot_dimension_numbers<[1], [0], [0], [1], [0, 0, 1, 1], [], []>} : vector<16x256xbf16>, vector<256x1024xbf16>, vector<16x1024xf32> -> vector<16x1024xf32>
      %c0_11 = arith.constant 0 : index
      %c0_12 = arith.constant 0 : index
      %19 = vector.load %arg8[%c0_11, %c0_12] : memref<16x1xf32, #tpu.memory_space<vmem>>, vector<16x1xf32>
      %20 = vector.broadcast %19 : vector<16x1xf32> to vector<16x1024xf32>
      %21 = arith.mulf %18, %20 : vector<16x1024xf32>
      %22 = vector.extract_strided_slice %21 {offsets = [0, 0], sizes = [16, 512], strides = [1, 1]} : vector<16x1024xf32> to vector<16x512xf32>
      %23 = arith.negf %22 : vector<16x512xf32>
      %24 = math.exp %23 : vector<16x512xf32>
      %cst_13 = arith.constant 1.000000e+00 : f32
      %25 = vector.broadcast %cst_13 : f32 to vector<16x512xf32>
      %26 = arith.addf %25, %24 : vector<16x512xf32>
      %27 = arith.divf %25, %26 : vector<16x512xf32>
      %28 = arith.mulf %22, %27 : vector<16x512xf32>
      %29 = vector.extract_strided_slice %21 {offsets = [0, 512], sizes = [16, 512], strides = [1, 1]} : vector<16x1024xf32> to vector<16x512xf32>
      %30 = arith.mulf %28, %29 : vector<16x512xf32>
      %31 = arith.truncf %30 : vector<16x512xf32> to vector<16x512xbf16>
      %32 = arith.index_cast %arg1 : i32 to index
      %c0_14 = arith.constant 0 : index
      %c0_15 = arith.constant 0 : index
      %33 = vector.load %arg10[%32, %c0_14, %c0_15] : memref<1x16x512xbf16, #tpu.memory_space<vmem>>, vector<1x16x512xbf16>
      %34 = vector.shape_cast %33 : vector<1x16x512xbf16> to vector<16x512xbf16>
      %35 = vector.shape_cast %31 : vector<16x512xbf16> to vector<1x16x512xbf16>
      tpu.vector_store %arg10[%32, %c0_14, %c0_15], %35 {strides = array<i32>} : memref<1x16x512xbf16, #tpu.memory_space<vmem>>, vector<1x16x512xbf16>,
      %c0_16 = arith.constant 0 : index
      %c0_17 = arith.constant 0 : index
      %36 = vector.load %arg9[%c0_16, %c0_17] : memref<16x1xf32, #tpu.memory_space<vmem>>, vector<16x1xf32>
      %37 = math.absf %31 : vector<16x512xbf16>
      %cst_18 = arith.constant dense<0xFF80> : vector<16xbf16>
      %38 = vector.multi_reduction <maximumf>, %37, %cst_18 [1] : vector<16x512xbf16> to vector<16xbf16>
      %39 = vector.shape_cast %38 : vector<16xbf16> to vector<16x1xbf16>
      %40 = arith.extf %39 : vector<16x1xbf16> to vector<16x1xf32>
      %41 = arith.maximumf %36, %40 : vector<16x1xf32>
      %c0_19 = arith.constant 0 : index
      %c0_20 = arith.constant 0 : index
      %42 = vector.load %arg9[%c0_19, %c0_20] : memref<16x1xf32, #tpu.memory_space<vmem>>, vector<16x1xf32>
      tpu.vector_store %arg9[%c0_19, %c0_20], %41 {strides = array<i32>} : memref<16x1xf32, #tpu.memory_space<vmem>>, vector<16x1xf32>,
    } else {
    }
    %c1_i32_2 = arith.constant 1 : i32
    %6 = arith.cmpi eq, %arg1, %c1_i32_2 : i32
    %7 = arith.extui %6 : i1 to i32
    %c0_i32_3 = arith.constant 0 : i32
    %8 = arith.cmpi ne, %7, %c0_i32_3 : i32
    scf.if %8 {
      %cst = arith.constant 0.000000e+00 : f32
      %15 = vector.broadcast %cst : f32 to vector<16x256xf32>
      %c0 = arith.constant 0 : index
      %c0_8 = arith.constant 0 : index
      %16 = vector.load %arg11[%c0, %c0_8] : memref<16x256xf32, #tpu.memory_space<vmem>>, vector<16x256xf32>
      tpu.vector_store %arg11[%c0, %c0_8], %15 {strides = array<i32>} : memref<16x256xf32, #tpu.memory_space<vmem>>, vector<16x256xf32>,
      %c0_9 = arith.constant 0 : index
      %c0_10 = arith.constant 0 : index
      %17 = vector.load %arg9[%c0_9, %c0_10] : memref<16x1xf32, #tpu.memory_space<vmem>>, vector<16x1xf32>
      %cst_11 = arith.constant 9.99999974E-6 : f32
      %18 = vector.broadcast %cst_11 : f32 to vector<16x1xf32>
      %19 = arith.maximumf %17, %18 : vector<16x1xf32>
      %cst_12 = arith.constant 1.270000e+02 : f32
      %20 = vector.broadcast %cst_12 : f32 to vector<16x1xf32>
      %21 = arith.divf %20, %19 : vector<16x1xf32>
      %c0_13 = arith.constant 0 : index
      %c0_14 = arith.constant 0 : index
      %22 = vector.load %arg8[%c0_13, %c0_14] : memref<16x1xf32, #tpu.memory_space<vmem>>, vector<16x1xf32>
      tpu.vector_store %arg8[%c0_13, %c0_14], %21 {strides = array<i32>} : memref<16x1xf32, #tpu.memory_space<vmem>>, vector<16x1xf32>,
    } else {
    }
    %c1_i32_4 = arith.constant 1 : i32
    %9 = arith.cmpi sge, %arg1, %c1_i32_4 : i32
    %10 = arith.extui %9 : i1 to i32
    %c0_i32_5 = arith.constant 0 : i32
    %11 = arith.cmpi ne, %10, %c0_i32_5 : i32
    scf.if %11 {
      %c1_i32_8 = arith.constant 1 : i32
      %15 = arith.subi %arg1, %c1_i32_8 : i32
      %16 = arith.index_cast %15 : i32 to index
      %c0 = arith.constant 0 : index
      %c0_9 = arith.constant 0 : index
      %17 = vector.load %arg10[%16, %c0, %c0_9] : memref<1x16x512xbf16, #tpu.memory_space<vmem>>, vector<1x16x512xbf16>
      %18 = vector.shape_cast %17 : vector<1x16x512xbf16> to vector<16x512xbf16>
      %19 = arith.extf %18 : vector<16x512xbf16> to vector<16x512xf32>
      %c0_10 = arith.constant 0 : index
      %c0_11 = arith.constant 0 : index
      %20 = vector.load %arg8[%c0_10, %c0_11] : memref<16x1xf32, #tpu.memory_space<vmem>>, vector<16x1xf32>
      %21 = vector.broadcast %20 : vector<16x1xf32> to vector<16x512xf32>
      %22 = arith.mulf %19, %21 : vector<16x512xf32>
      %23 = math.roundeven %22 : vector<16x512xf32>
      %24 = arith.truncf %23 : vector<16x512xf32> to vector<16x512xbf16>
      %c0_12 = arith.constant 0 : index
      %c0_13 = arith.constant 0 : index
      %25 = vector.load %arg5[%c0_12, %c0_13] : memref<512x256xi8, #tpu.memory_space<vmem>>, vector<512x256xi8>
      %26 = arith.sitofp %25 : vector<512x256xi8> to vector<512x256xbf16>
      %c0_14 = arith.constant 0 : index
      %c0_15 = arith.constant 0 : index
      %27 = vector.load %arg11[%c0_14, %c0_15] : memref<16x256xf32, #tpu.memory_space<vmem>>, vector<16x256xf32>
      %cst = arith.constant dense<0.000000e+00> : vector<16x256xf32>
      %28 = tpu.matmul %24, %26, %cst {dimension_numbers = #tpu.dot_dimension_numbers<[1], [0], [0], [1], [0, 0, 1, 1], [], []>} : vector<16x512xbf16>, vector<512x256xbf16>, vector<16x256xf32> -> vector<16x256xf32>
      %29 = arith.addf %27, %28 : vector<16x256xf32>
      %c0_16 = arith.constant 0 : index
      %c0_17 = arith.constant 0 : index
      %30 = vector.load %arg11[%c0_16, %c0_17] : memref<16x256xf32, #tpu.memory_space<vmem>>, vector<16x256xf32>
      tpu.vector_store %arg11[%c0_16, %c0_17], %29 {strides = array<i32>} : memref<16x256xf32, #tpu.memory_space<vmem>>, vector<16x256xf32>,
    } else {
    }
    %c1_i32_6 = arith.constant 1 : i32
    %12 = arith.cmpi eq, %arg1, %c1_i32_6 : i32
    %13 = arith.extui %12 : i1 to i32
    %c0_i32_7 = arith.constant 0 : i32
    %14 = arith.cmpi ne, %13, %c0_i32_7 : i32
    scf.if %14 {
      %c0 = arith.constant 0 : index
      %c0_8 = arith.constant 0 : index
      %15 = vector.load %arg9[%c0, %c0_8] : memref<16x1xf32, #tpu.memory_space<vmem>>, vector<16x1xf32>
      %cst = arith.constant 9.99999974E-6 : f32
      %16 = vector.broadcast %cst : f32 to vector<16x1xf32>
      %17 = arith.maximumf %15, %16 : vector<16x1xf32>
      %c1 = arith.constant 1 : index
      %18 = memref.load %arg2[%c1] : memref<2xf32, #tpu.memory_space<smem>>
      %cst_9 = arith.constant 1.270000e+02 : f32
      %19 = arith.divf %18, %cst_9 : f32
      %20 = vector.broadcast %19 : f32 to vector<16x1xf32>
      %21 = arith.mulf %17, %20 : vector<16x1xf32>
      %c0_10 = arith.constant 0 : index
      %c0_11 = arith.constant 0 : index
      %22 = vector.load %arg11[%c0_10, %c0_11] : memref<16x256xf32, #tpu.memory_space<vmem>>, vector<16x256xf32>
      %23 = vector.broadcast %21 : vector<16x1xf32> to vector<16x256xf32>
      %24 = arith.mulf %22, %23 : vector<16x256xf32>
      %25 = arith.truncf %24 : vector<16x256xf32> to vector<16x256xbf16>
      %c0_12 = arith.constant 0 : index
      %c0_13 = arith.constant 0 : index
      %26 = vector.load %arg6[%c0_12, %c0_13] : memref<16x256xbf16, #tpu.memory_space<vmem>>, vector<16x256xbf16>
      tpu.vector_store %arg6[%c0_12, %c0_13], %25 {strides = array<i32>} : memref<16x256xbf16, #tpu.memory_space<vmem>>, vector<16x256xbf16>,
    } else {
    }
    return
  }
  func.func @transform_0(%arg0: i32, %arg1: i32) -> i32 {
    %c0_i32 = arith.constant 0 : i32
    %c0_i32_0 = arith.constant 0 : i32
    return %c0_i32 : i32
  }
  func.func @transform_1(%arg0: i32, %arg1: i32) -> (i32, i32) {
    %c0_i32 = arith.constant 0 : i32
    %c0_i32_0 = arith.constant 0 : i32
    return %arg0, %c0_i32 : i32, i32
  }
  func.func @transform_2(%arg0: i32, %arg1: i32) -> (i32, i32) {
    %c0_i32 = arith.constant 0 : i32
    %0 = arith.minsi %arg1, %c0_i32 : i32
    %c0_i32_0 = arith.constant 0 : i32
    %c0_i32_1 = arith.constant 0 : i32
    return %c0_i32_0, %0 : i32, i32
  }
  func.func @transform_3(%arg0: i32, %arg1: i32) -> (i32, i32) {
    %c1_i32 = arith.constant 1 : i32
    %0 = arith.subi %arg1, %c1_i32 : i32
    %c0_i32 = arith.constant 0 : i32
    %1 = arith.maxsi %0, %c0_i32 : i32
    %c0_i32_0 = arith.constant 0 : i32
    %c0_i32_1 = arith.constant 0 : i32
    return %1, %c0_i32_0 : i32, i32
  }
  func.func @transform_4(%arg0: i32, %arg1: i32) -> (i32, i32) {
    %c0_i32 = arith.constant 0 : i32
    %c0_i32_0 = arith.constant 0 : i32
    return %arg0, %c0_i32 : i32, i32
  }
}

</mosaic_0001>

<bundles_post_ra>
// kernel: tpu_custom_call.1
= control target key start
LH: loop header
LB: loop body
LE: loop exit
PB: predicated region body
PF: predicated region fallthrough
CT: control target
= control target key end

     0   :  { %9 = vsyncpa [#allocation10], 0  ;;  %s2182_s0 = inlined_call_operand.hbm [shape: f32[2], index: 0, kind: input, shape index: {}]   ;;  %s2183_s1 = inlined_call_operand.hbm [shape: bf16[16,256], index: 1, kind: input, shape index: {}]   ;;  %s2184_s2 = inlined_call_operand.hbm [shape: s8[256,1024], index: 2, kind: input, shape index: {}]   ;;  %s2185_s3 = inlined_call_operand.hbm [shape: s8[512,256], index: 3, kind: input, shape index: {}]   ;;  %s2186_s4 = inlined_call_operand.hbm [shape: bf16[16,256], index: 4, kind: output, shape index: {}]  }
   0x1   :  { %10 = vsyncpa [#allocation8], 0 }
   0x2   :  { %11 = vsyncpa [#allocation13], 0 }
   0x3   :  { %13 = vsyncpa [#allocation13 + $0x1], 0 }
   0x4   :  { %14 = vsyncpa [#allocation9], 0  ;;  %s1790_s15 = smov 0   ;;  %s1792_s16 = smov 0  }
   0x5   :  { %s1794_s17 = smov 0   ;;  %s1796_s18 = smov 0  }
   0x6   :  { %s1798_s19 = smov 0   ;;  %s1800_s20 = smov 0  }
   0x7   :  { %s1802_s21 = smov 0  }
   0x8 LB: > { %s29_s22 = sadd.s32 1, %s1741_s20  ;;  %p1714_p1 = scmp.ne.s32.totalorder %s1733_s18, 0  ;;  %s1745_s21 = sphi %s1802_s21, %s20_s21   ;;  %s1741_s20 = sphi %s1800_s20, %s2213_s20   ;;  %s1737_s19 = sphi %s1798_s19, %s2212_s19   ;;  %s1733_s18 = sphi %s1796_s18, %s2172_s18   ;;  %s1729_s17 = sphi %s1794_s17, %s2211_s17   ;;  %s1725_s16 = sphi %s1792_s16, %s2167_s16   ;;  %s1721_s15 = sphi %s1790_s15, %s2210_s15  }
   0x9   : > { %p30_p0 = scmp.ge.s32.totalorder %s29_s22, 2  ;;  %p2188_p2 = scmp.eq.s32.totalorder %s1745_s21, 0 }
   0xa   : > { %p2187_p4 = scmp.lt.s32.totalorder %s1745_s21, 2  ;;  %s211_s23 = sand.u32 1, %s1745_s21  }
   0xb   : > { %s2215_s22 = smov (%p30_p0, %s29_s22), 0  ;;  %p99_p3 = por %p1714_p1, %p2188_p2 }
   0xc   : > { %s1747_s24 = smov [#allocation12]   ;;  %s1842_s27 = scalar_lea.sflag [#allocation13], %s211_s23 }
   0xd   : > { %s224_s25 = sshll.u32 %s1747_s24, 4  ;;  %p1838_p5 = pnand %p2187_p4, %p99_p3  ;;  %s1834_s25 = int_to_ptr.vmem [resolvable:$true] %s224_s25 }
   0xe   : > { %s1531_s30 = scalar_lea.hbm %s2184_s2, 8192 }
   0xf   : > { %p1532_p6 = scmp.ne.s32.totalorder %s2184_s2, %s1531_s30  ;;  %p1533_p7 = pneg %p1838_p5 }
  0x10   : > { %p1538_p10 = scmp.lt.u32.totalorder %s1531_s30, %s1531_s30  ;;  %p1540_p11 = scmp.lt.u32.totalorder %s1531_s30, %s2184_s2 }
  0x11   : > { %p1534_p8 = pnand %p1533_p7, %p1532_p6 }
  0x12   : > { %p1541_p12 = por %p1540_p11, %p1538_p10 }
  0x13   : > { %p1535_p9 = pneg %p1534_p8 }
  0x15   : > { %p1542_p13 = pnand %p1541_p12, %p1535_p9 }
  0x17   : > { %1545 = shalt.err (!%p1542_p13)
}
  0x18   : > { %s1546_s9 = scalar_lea.vmem %s1834_s25, 8192  ;;  %s1553_s10 = scalar_lea.vmem %s1834_s25, 16384 }
  0x19   : > { %p1547_p0 = scmp.ne.s32.totalorder %s1834_s25, %s1546_s9  ;;  %p1554_p6 = scmp.lt.s32.totalorder %s1834_s25, %s1834_s25 }
  0x1a   : > { %p1555_p8 = scmp.lt.s32.totalorder %s1553_s10, %s1546_s9 }
  0x1b   : > { %p1549_p1 = pnand %p1547_p0, %p1533_p7 }
  0x1c   : > { %p1556_p4 = por %p1555_p8, %p1554_p6 }
  0x1d   : > { %p1550_p3 = pneg %p1549_p1 }
  0x1f   : > { %p1557_p2 = pnand %p1556_p4, %p1550_p3 }
  0x21   : > { %1560 = shalt.err (!%p1557_p2)
}
  0x22   : > { %s1748_s11 = smov 1024   ;;  %s1749_s12 = smov 64  }
  0x23   : > { %1389 = dma.hbm_to_vmem [thread:$0]  (!%p1838_p5), %s2184_s2, 8192, %s1834_s25, %s1842_s27, %s1748_s11, %s1748_s11, %s1749_s12  }
  0x24   : > { %s1868_s23 = sadd.s32 4294967295, %s1745_s21   ;;  %p103_p2 = scmp.ne.s32.totalorder %s1733_s18, %s1729_s17 }
  0x25   : > { %p2189_p4 = scmp.eq.s32.totalorder %s1868_s23, 0  ;;  %p135_p7 = scmp.ne.s32.totalorder %s1725_s16, %s1721_s15 }
  0x26   : > { %p1298_p9 = scmp.ge.s32.totalorder %s1745_s21, 1  ;;  %p172_p11 = scmp.lt.s32.totalorder %s1745_s21, 3 }
  0x27   : > { %p1878_p10 = por %p2189_p4, %p103_p2  ;;  %p1885_p12 = por %p135_p7, %p2189_p4 }
  0x28   : > { %p1889_p5 = pnand %p1298_p9, %p172_p11  ;;  %s1750_s15 = smov [#allocation11]  }
  0x29   : > { %s2195_s24 = scalar_select %p1878_p10, 1, 0 }
  0x2a   : > { %s2196_s26 = scalar_select %p1885_p12, 1, 0 }
  0x2b   : > { %s2197_s25 = scalar_select %p1889_p5, 1, 0 }
  0x2c   : > { %p1379_p13 = pneg %p1889_p5  ;;  %s197_s17 = sshll.u32 %s1750_s15, 4  ;;  %s1895_s17 = int_to_ptr.vmem [resolvable:$true] %s197_s17 }
  0x2d   : > { %s1561_s5 = scalar_lea.hbm %s2182_s0, 16 }
  0x2e   : > { %p1899_p0 = pnand %p1379_p13, %p2189_p4  ;;  %p1562_p1 = scmp.ne.s32.totalorder %s2182_s0, %s1561_s5 }
  0x2f   : > { %p1568_p2 = scmp.lt.u32.totalorder %s1561_s5, %s2182_s0 }
  0x30   : > { %p1563_p3 = pneg %p1899_p0 }
  0x32   : > { %p1564_p6 = pnand %p1563_p3, %p1562_p1 }
  0x34   : > { %p1565_p8 = pneg %p1564_p6 }
  0x36   : > { %p1570_p7 = pnand %p1568_p2, %p1565_p8 }
  0x38   : > { %1573 = shalt.err (!%p1570_p7)
}
  0x39   : > { %s1751_s10 = smov [#allocation7]   ;;  %s1574_s15 = scalar_lea.hbm %s2183_s1, 256 }
  0x3a   : > { %1382 = dma.hbm_to_smem (!%p1899_p0), %s2182_s0, 16, %s1751_s10, [#allocation10]  }
  0x3b   : > { %p1575_p9 = scmp.ne.s32.totalorder %s2183_s1, %s1574_s15  ;;  %p1581_p1 = scmp.lt.u32.totalorder %s1574_s15, %s2183_s1 }
  0x3d   : > { %p1577_p11 = pnand %p1575_p9, %p1563_p3 }
  0x3f   : > { %p1578_p13 = pneg %p1577_p11 }
  0x41   : > { %p1583_p6 = pnand %p1581_p1, %p1578_p13 }
  0x43   : > { %1586 = shalt.err (!%p1583_p6)
}
  0x44   : > { %s1587_s7 = scalar_lea.vmem %s1895_s17, 256  ;;  %p1595_p4 = scmp.lt.s32.totalorder %s1895_s17, %s1895_s17 }
  0x45   : > { %p1588_p8 = scmp.ne.s32.totalorder %s1895_s17, %s1587_s7  ;;  %p1596_p9 = scmp.lt.s32.totalorder %s1587_s7, %s1587_s7 }
  0x47   : > { %p1590_p2 = pnand %p1588_p8, %p1563_p3  ;;  %p1597_p11 = por %p1596_p9, %p1595_p4 }
  0x49   : > { %p1591_p7 = pneg %p1590_p2 }
  0x4b   : > { %p1598_p12 = pnand %p1597_p11, %p1591_p7 }
  0x4d   : > { %1601 = shalt.err (!%p1598_p12)
}
  0x4e   : > { %s1752_s8 = smov 128   ;;  %s1753_s9 = smov 8  }
  0x4f   : > { %1385 = dma.hbm_to_vmem [thread:$0]  (!%p1899_p0), %s2183_s1, 256, %s1895_s17, [#allocation8], %s1752_s8, %s1752_s8, %s1753_s9  }
  0x50   : > { %p1715_p3 = scmp.ne.s32.totalorder %s1725_s16, 0  ;;  %p2199_p13 = scmp.eq.s32.totalorder %s1745_s21, 0 }
  0x51   : > { %s1754_s12 = smov [#allocation14]   ;;  %p2200_p4 = scmp.lt.s32.totalorder %s1745_s21, 2 }
  0x52   : > { %p131_p1 = por %p1715_p3, %p2199_p13  ;;  %s249_s13 = sshll.u32 %s1754_s12, 4  ;;  %s250_s13 = int_to_ptr.vmem [resolvable:$true] %s249_s13 }
  0x53   : > { %s1602_s28 = scalar_lea.hbm %s2185_s3, 4096 }
  0x54   : > { %p1952_p6 = pnand %p2200_p4, %p131_p1  ;;  %p1603_p12 = scmp.ne.s32.totalorder %s2185_s3, %s1602_s28 }
  0x55   : > { %p1609_p7 = scmp.lt.u32.totalorder %s1602_s28, %s1602_s28  ;;  %p1611_p9 = scmp.lt.u32.totalorder %s1602_s28, %s2185_s3 }
  0x56   : > { %s2201_s14 = scalar_select %p1952_p6, 1, 0 }
  0x57   : > { %p1604_p0 = pneg %p1952_p6  ;;  %p1612_p11 = por %p1611_p9, %p1609_p7 }
  0x59   : > { %p1605_p8 = pnand %p1604_p0, %p1603_p12 }
  0x5b   : > { %p1606_p2 = pneg %p1605_p8 }
  0x5d   : > { %p1613_p3 = pnand %p1612_p11, %p1606_p2 }
  0x5f   : > { %1616 = shalt.err (!%p1613_p3)
}
  0x60   : > { %s1617_s7 = scalar_lea.vmem %s250_s13, 4096  ;;  %s1624_s8 = scalar_lea.vmem %s250_s13, 8192 }
  0x61   : > { %p1618_p13 = scmp.ne.s32.totalorder %s250_s13, %s1617_s7  ;;  %p1625_p10 = scmp.lt.s32.totalorder %s250_s13, %s250_s13 }
  0x62   : > { %p1626_p5 = scmp.lt.s32.totalorder %s1624_s8, %s1617_s7 }
  0x63   : > { %p1620_p1 = pnand %p1618_p13, %p1604_p0 }
  0x64   : > { %p1627_p6 = por %p1626_p5, %p1625_p10 }
  0x65   : > { %p1621_p4 = pneg %p1620_p1 }
  0x67   : > { %p1628_p12 = pnand %p1627_p6, %p1621_p4 }
  0x69   : > { %1631 = shalt.err (!%p1628_p12)
}
  0x6a   : > { %s1755_s9 = smov 256   ;;  %s1756_s10 = smov 16  }
  0x6b   : > { %p2202_p8 = scmp.ne.s32.totalorder %s2201_s14, 0  ;;  %p2203_p2 = scmp.ne.s32.totalorder %s2197_s25, 0 }
  0x6c   : > { %p2204_p0 = scmp.eq.s32.totalorder (!%p2203_p2), %s1868_s23, 0 }
  0x6d   : > { %1392 = dma.hbm_to_vmem [thread:$0]  (!%p2202_p8), %s2185_s3, 4096, %s250_s13, %s1842_s27, %s1755_s9, %s1755_s9, %s1756_s10  }
  0x6e   : > { %261 = sbr.rel (%p2203_p2) target bundleno = 1381 (0x565), region = 36 }
  0x75   : > { %1695 = dma.done.wait (%p2204_p0), [#allocation10], 16   ;;  %p2205_p7 = pmov %p2204_p0 }
  0x76   : > { %p2206_p10 = pmov %p2204_p0 }
  0x77   : > { %1697 = vsyncadd (%p2205_p7), [#allocation10], 4294967280 }
  0x78   : > { %1699 = dma.done.wait (%p2206_p10), [#allocation8], 256   ;;  %p2207_p5 = pmov %p2204_p0 }
  0x79   : > { %s271_s14 = sand.u32 1, %s1868_s23   ;;  %s273_s27 = sand.u32 1, %s1733_s18  }
  0x7a   : > { %1701 = vsyncadd (%p2207_p5), [#allocation8], 4294967040  ;;  %s1313_s13 = sshll.u32 %s273_s27, 9  ;;  %s272_s25 = scalar_lea.sflag [#allocation13], %s271_s14 }
  0x7b   : > { %s1985_s15 = scalar_lea.vmem [#allocation12], %s1313_s13  ;;  %p2208_p6 = scmp.ne.s32.totalorder %s2195_s24, 0 }
  0x7d   : > { %1703 = dma.done.wait (%p2208_p6), %s272_s25, 8192  }
  0x7e   : > { %1705 = vsyncadd (%p2208_p6), %s272_s25, 4294959104  ;;  %s282_s29 = sand.u32 1, %s1725_s16   ;;  %p2209_p9 = scmp.ne.s32.totalorder %s2196_s26, 0 }
  0x7f   : > { %s1314_s28 = sshll.u32 %s282_s29, 8 }
  0x80   : > { %s1992_s30 = scalar_lea.vmem [#allocation14], %s1314_s28 }
  0x81   : > { %1707 = dma.done.wait (%p2209_p9), %s272_s25, 4096  }
  0x82   : > { %1709 = vsyncadd (%p2209_p9), %s272_s25, 4294963200 }
  0x83   : > { %289 = sfence }
  0x84   : > { %p1315_p11 = scmp.ne.s32.totalorder %s1737_s19, 0 }
  0x85   : > { %v323_v0 = vld [vmem:[#allocation11] sm:$0xff] (!%p1315_p11)  ;;  %v324_v1 = vld [vmem:[#allocation11 + $0x8] sm:$0xff] (!%p1315_p11)  ;;  %vm364_vm0 = vcmask (!%p1315_p11), 7168   ;;  %v1757_v6 = vmov (!%p1315_p11), 0.0   ;;  %s357_s24 = sld [smem:[#allocation7]] (!%p1315_p11) }
  0x86   : > { %322 = sbr.rel (%p1315_p11) target bundleno = 308 (0x134), region = 56  ;;  %v325_v2 = vunpack.c.l.bf16 (!%p1315_p11), %v323_v0  ;;  %v326_v3 = vunpack.c.h.bf16 (!%p1315_p11), %v323_v0  ;;  %v327_v4 = vunpack.c.l.bf16 (!%p1315_p11), %v324_v1  ;;  %v328_v5 = vunpack.c.h.bf16 (!%p1315_p11), %v324_v1  ;;  %367 = vst.msk [vmem:[#allocation4] sm:$0xff] (!%p1315_p11), %vm364_vm0, %v1757_v6  ;;  %368 = vst.msk [vmem:[#allocation4 + $0x8] sm:$0xff] (!%p1315_p11), %vm364_vm0, %v1757_v6 }
  0x88   : > { %v329_v7 = vand.u32 (!%p1315_p11), 2147483647, %v325_v2  ;;  %v330_v8 = vand.u32 (!%p1315_p11), 2147483647, %v326_v3  ;;  %v331_v9 = vand.u32 (!%p1315_p11), 2147483647, %v327_v4 }
  0x89   : > { %v332_v10 = vand.u32 (!%p1315_p11), 2147483647, %v328_v5 }
  0x8a   : > { %v333_v11 = vmax.f32.f32 (!%p1315_p11), %v329_v7, %v330_v8 }
  0x8b   : > { %v336_v12 = vmax.f32.f32 (!%p1315_p11), %v331_v9, %v332_v10  ;;  %s360_s26 = smul.f32 (!%p1315_p11), 0.007874016, %s357_s24 }
  0x8c   : > { %334 = vmax.xlane.f32.xlu0 (!%p1315_p11), %v333_v11 }
  0x8d   : > { %v361_v13 = vstv %s360_s26 }
  0x90   : > { %337 = vmax.xlane.f32.xlu0 %v336_v12 }
 0x119   : > { %v335_v14 = vpop.xlane.xlu0 %334 }
 0x11a   : > { %v339_v15 = vmax.f32 %v335_v14, 1e-05 }
 0x11c   : > { %1488 = vrcp.f32 %v339_v15  ;;  %v362_v16 = vmul.f32 %v361_v13, %v339_v15 }
 0x11d   : > { %v338_v17 = vpop.xlane.xlu0 %337 }
 0x11e   : > { %365 = vst.msk [vmem:[#allocation3] sm:$0xff] %vm364_vm0, %v362_v16  ;;  %v340_v18 = vmax.f32 %v338_v17, 1e-05 }
 0x120   : > { %1490 = vrcp.f32 %v340_v18  ;;  %v363_v19 = vmul.f32 %v361_v13, %v340_v18 }
 0x122   : > { %366 = vst.msk [vmem:[#allocation3 + $0x8] sm:$0xff] %vm364_vm0, %v363_v19 }
 0x126   : > { %v1489_v20 = vpop.eup %1488 }
 0x127   : > { %v342_v21 = vmul.f32 127.0, %v1489_v20 }
 0x129   : > { %v345_v23 = vmul.f32 %v342_v21, %v325_v2  ;;  %v346_v24 = vmul.f32 %v342_v21, %v326_v3 }
 0x12a   : > { %v1491_v22 = vpop.eup %1490 }
 0x12b   : > { %v344_v25 = vmul.f32 127.0, %v1491_v22  ;;  %v1351_v28 = vround.rtne.f32 %v345_v23  ;;  %v1352_v29 = vround.rtne.f32 %v346_v24 }
 0x12d   : > { %v347_v26 = vmul.f32 %v344_v25, %v327_v4  ;;  %v348_v27 = vmul.f32 %v344_v25, %v328_v5 }
 0x12f   : > { %v1353_v30 = vround.rtne.f32 %v347_v26  ;;  %v1354_v31 = vround.rtne.f32 %v348_v27 }
 0x131   : > { %v353_v32 = vpack.c.bf16 %v1353_v30, %v1351_v28  ;;  %v354_v33 = vpack.c.bf16 %v1354_v31, %v1352_v29 }
 0x133   : > { %355 = vst [vmem:[#allocation2] sm:$0xff] %v353_v32  ;;  %356 = vst [vmem:[#allocation2 + $0x8] sm:$0xff] %v354_v33 }
 0x134 PF: > { %p1316_p3 = scmp.ge.s32.totalorder %s1737_s19, 1 }
 0x135   : > { %v374_v34 = vld [vmem:[%s1985_s15 + $0x8] sm:$0xff] (!%p1316_p3)  ;;  %v376_v35 = vld [vmem:[%s1985_s15 + $0x18] sm:$0xff] (!%p1316_p3)  ;;  %v373_v36 = vld [vmem:[%s1985_s15] sm:$0xff] (!%p1316_p3)  ;;  %v1758_v32 = vmov (!%p1316_p3), 0   ;;  %s1343_s5 = sshll.u32 (!%p1316_p3), %s1737_s19, 5  ;;  %vm857_vm1 = vcmask (!%p1316_p3), 7168  }
 0x136   : > { %372 = sbr.rel (%p1316_p3) target bundleno = 818 (0x332), region = 60  ;;  %v438_v37 = vunpack.c.l.s8.bf16 (!%p1316_p3), %v374_v34  ;;  %v446_v38 = vunpack.c.h.s8.bf16 (!%p1316_p3), %v374_v34  ;;  %v440_v39 = vunpack.c.l.s8.bf16 (!%p1316_p3), %v376_v35  ;;  %v448_v40 = vunpack.c.h.s8.bf16 (!%p1316_p3), %v376_v35  ;;  %v375_v41 = vld [vmem:[%s1985_s15 + $0x10] sm:$0xff] (!%p1316_p3)  ;;  %v382_v44 = vld [vmem:[%s1985_s15 + $0x48] sm:$0xff] (!%p1316_p3)  ;;  %v384_v45 = vld [vmem:[%s1985_s15 + $0x58] sm:$0xff] (!%p1316_p3)  ;;  %1492 = vset.pattern.permute.xlu0 (!%p1316_p3), %v1758_v32  ;;  %s837_s17 = scalar_lea.vmem (!%p1316_p3), [#allocation5], %s1343_s5 }
 0x137   : > { %v437_v42 = vunpack.c.l.s8.bf16 (!%p1316_p3), %v373_v36  ;;  %v439_v43 = vunpack.c.l.s8.bf16 (!%p1316_p3), %v375_v41  ;;  %v445_v46 = vunpack.c.h.s8.bf16 (!%p1316_p3), %v373_v36  ;;  %v447_v47 = vunpack.c.h.s8.bf16 (!%p1316_p3), %v375_v41  ;;  %v381_v50 = vld [vmem:[%s1985_s15 + $0x40] sm:$0xff] (!%p1316_p3)  ;;  %v383_v51 = vld [vmem:[%s1985_s15 + $0x50] sm:$0xff] (!%p1316_p3)  ;;  %v390_v56 = vld [vmem:[%s1985_s15 + $0x88] sm:$0xff] (!%p1316_p3) }
 0x138   : > { %567 = vmatprep.subr.bf16.mxu0 (!%p1316_p3), %v438_v37  ;;  %610 = vmatprep.subr.bf16.mxu1 (!%p1316_p3), %v440_v39  ;;  %v454_v48 = vunpack.c.l.s8.bf16 (!%p1316_p3), %v382_v44  ;;  %v456_v49 = vunpack.c.l.s8.bf16 (!%p1316_p3), %v384_v45  ;;  %v453_v52 = vunpack.c.l.s8.bf16 (!%p1316_p3), %v381_v50  ;;  %v455_v53 = vunpack.c.l.s8.bf16 (!%p1316_p3), %v383_v51  ;;  %v392_v57 = vld [vmem:[%s1985_s15 + $0x98] sm:$0xff] (!%p1316_p3)  ;;  %v389_v63 = vld [vmem:[%s1985_s15 + $0x80] sm:$0xff] (!%p1316_p3)  ;;  %v391_v0 = vld [vmem:[%s1985_s15 + $0x90] sm:$0xff] (!%p1316_p3) }
 0x139   : > { %568 = vmatpush1.bf16.msra.mxu0 (!%p1316_p3), %v437_v42  ;;  %611 = vmatpush1.bf16.msra.mxu1 (!%p1316_p3), %v439_v43  ;;  %v462_v54 = vunpack.c.h.s8.bf16 (!%p1316_p3), %v382_v44  ;;  %v464_v55 = vunpack.c.h.s8.bf16 (!%p1316_p3), %v384_v45  ;;  %v461_v59 = vunpack.c.h.s8.bf16 (!%p1316_p3), %v381_v50  ;;  %v463_v60 = vunpack.c.h.s8.bf16 (!%p1316_p3), %v383_v51  ;;  %v398_v5 = vld [vmem:[%s1985_s15 + $0xc8] sm:$0xff] (!%p1316_p3)  ;;  %v400_v6 = vld [vmem:[%s1985_s15 + $0xd8] sm:$0xff] (!%p1316_p3)  ;;  %v397_v11 = vld [vmem:[%s1985_s15 + $0xc0] sm:$0xff] (!%p1316_p3) }
 0x13a   : > { %569 = vmatprep.subr.bf16.mxu0 (!%p1316_p3), %v446_v38  ;;  %612 = vmatprep.subr.bf16.mxu1 (!%p1316_p3), %v448_v40  ;;  %v2014_v58 = vld [vmem:[#allocation2 + $0x8] sm:$0xff] (!%p1316_p3)  ;;  %v470_v61 = vunpack.c.l.s8.bf16 (!%p1316_p3), %v390_v56  ;;  %v472_v62 = vunpack.c.l.s8.bf16 (!%p1316_p3), %v392_v57  ;;  %v469_v1 = vunpack.c.l.s8.bf16 (!%p1316_p3), %v389_v63  ;;  %v471_v2 = vunpack.c.l.s8.bf16 (!%p1316_p3), %v391_v0  ;;  %v399_v12 = vld [vmem:[%s1985_s15 + $0xd0] sm:$0xff] (!%p1316_p3)  ;;  %v408_v18 = vld [vmem:[%s1985_s15 + $0x118] sm:$0xff] (!%p1316_p3) }
 0x13b   : > { %599 = vmatprep.mubr.bf16.mxu0 (!%p1316_p3), %v2014_v58  ;;  %642 = vmatprep.mubr.bf16.mxu1 (!%p1316_p3), %v2014_v58  ;;  %v478_v3 = vunpack.c.h.s8.bf16 (!%p1316_p3), %v390_v56  ;;  %v480_v4 = vunpack.c.h.s8.bf16 (!%p1316_p3), %v392_v57  ;;  %v477_v7 = vunpack.c.h.s8.bf16 (!%p1316_p3), %v389_v63  ;;  %v479_v8 = vunpack.c.h.s8.bf16 (!%p1316_p3), %v391_v0  ;;  %v406_v17 = vld [vmem:[%s1985_s15 + $0x108] sm:$0xff] (!%p1316_p3)  ;;  %v405_v23 = vld [vmem:[%s1985_s15 + $0x100] sm:$0xff] (!%p1316_p3)  ;;  %v407_v24 = vld [vmem:[%s1985_s15 + $0x110] sm:$0xff] (!%p1316_p3) }
 0x13c   : > { %v486_v9 = vunpack.c.l.s8.bf16 (!%p1316_p3), %v398_v5  ;;  %v488_v10 = vunpack.c.l.s8.bf16 (!%p1316_p3), %v400_v6  ;;  %v485_v13 = vunpack.c.l.s8.bf16 (!%p1316_p3), %v397_v11  ;;  %v487_v14 = vunpack.c.l.s8.bf16 (!%p1316_p3), %v399_v12  ;;  %v739_v27 = vld [vmem:[#allocation3] sm:$0xff] (!%p1316_p3)  ;;  %v414_v30 = vld [vmem:[%s1985_s15 + $0x148] sm:$0xff] (!%p1316_p3)  ;;  %v416_v31 = vld [vmem:[%s1985_s15 + $0x158] sm:$0xff] (!%p1316_p3) }
 0x13d   : > { %570 = vmatpush1.bf16.msra.mxu0 %v445_v46  ;;  %613 = vmatpush1.bf16.msra.mxu1 %v447_v47  ;;  %v494_v15 = vunpack.c.h.s8.bf16 %v398_v5  ;;  %v496_v16 = vunpack.c.h.s8.bf16 %v400_v6  ;;  %v493_v19 = vunpack.c.h.s8.bf16 %v397_v11  ;;  %v495_v20 = vunpack.c.h.s8.bf16 %v399_v12  ;;  %v740_v35 = vld [vmem:[#allocation3 + $0x8] sm:$0xff]  ;;  %v413_v38 = vld [vmem:[%s1985_s15 + $0x140] sm:$0xff]  ;;  %v415_v39 = vld [vmem:[%s1985_s15 + $0x150] sm:$0xff] }
 0x13e   : > { %571 = vmatprep.subr.bf16.mxu0 %v454_v48  ;;  %614 = vmatprep.subr.bf16.mxu1 %v456_v49  ;;  %v502_v21 = vunpack.c.l.s8.bf16 %v406_v17  ;;  %v504_v22 = vunpack.c.l.s8.bf16 %v408_v18  ;;  %v501_v25 = vunpack.c.l.s8.bf16 %v405_v23  ;;  %v503_v26 = vunpack.c.l.s8.bf16 %v407_v24  ;;  %v422_v44 = vld [vmem:[%s1985_s15 + $0x188] sm:$0xff]  ;;  %v424_v45 = vld [vmem:[%s1985_s15 + $0x198] sm:$0xff]  ;;  %v421_v50 = vld [vmem:[%s1985_s15 + $0x180] sm:$0xff] }
 0x13f   : > { %v510_v28 = vunpack.c.h.s8.bf16 %v406_v17  ;;  %v512_v29 = vunpack.c.h.s8.bf16 %v408_v18  ;;  %743 = vperm.xlu0 %1492, %v739_v27   ;;  %v509_v33 = vunpack.c.h.s8.bf16 %v405_v23  ;;  %v511_v34 = vunpack.c.h.s8.bf16 %v407_v24  ;;  %v423_v51 = vld [vmem:[%s1985_s15 + $0x190] sm:$0xff]  ;;  %v430_v56 = vld [vmem:[%s1985_s15 + $0x1c8] sm:$0xff]  ;;  %v432_v57 = vld [vmem:[%s1985_s15 + $0x1d8] sm:$0xff] }
 0x140   : > { %v518_v36 = vunpack.c.l.s8.bf16 %v414_v30  ;;  %v520_v37 = vunpack.c.l.s8.bf16 %v416_v31  ;;  %v517_v40 = vunpack.c.l.s8.bf16 %v413_v38  ;;  %v519_v41 = vunpack.c.l.s8.bf16 %v415_v39  ;;  %v429_v63 = vld [vmem:[%s1985_s15 + $0x1c0] sm:$0xff]  ;;  %v431_v0 = vld [vmem:[%s1985_s15 + $0x1d0] sm:$0xff]  ;;  %v378_v5 = vld [vmem:[%s1985_s15 + $0x28] sm:$0xff] }
 0x141   : > { %572 = vmatpush1.bf16.msra.mxu0 %v453_v52  ;;  %615 = vmatpush1.bf16.msra.mxu1 %v455_v53  ;;  %v526_v42 = vunpack.c.h.s8.bf16 %v414_v30  ;;  %v528_v43 = vunpack.c.h.s8.bf16 %v416_v31  ;;  %v525_v46 = vunpack.c.h.s8.bf16 %v413_v38  ;;  %v527_v47 = vunpack.c.h.s8.bf16 %v415_v39  ;;  %v380_v6 = vld [vmem:[%s1985_s15 + $0x38] sm:$0xff]  ;;  %v377_v11 = vld [vmem:[%s1985_s15 + $0x20] sm:$0xff]  ;;  %v379_v12 = vld [vmem:[%s1985_s15 + $0x30] sm:$0xff] }
 0x142   : > { %573 = vmatprep.subr.bf16.mxu0 %v462_v54  ;;  %616 = vmatprep.subr.bf16.mxu1 %v464_v55  ;;  %v534_v48 = vunpack.c.l.s8.bf16 %v422_v44  ;;  %v536_v49 = vunpack.c.l.s8.bf16 %v424_v45  ;;  %v533_v52 = vunpack.c.l.s8.bf16 %v421_v50  ;;  %v535_v53 = vunpack.c.l.s8.bf16 %v423_v51  ;;  %v386_v18 = vld [vmem:[%s1985_s15 + $0x68] sm:$0xff]  ;;  %v385_v24 = vld [vmem:[%s1985_s15 + $0x60] sm:$0xff]  ;;  %v396_v31 = vld [vmem:[%s1985_s15 + $0xb8] sm:$0xff] }
 0x143   : > { %748 = vperm.xlu0 %1492, %v740_v35   ;;  %v542_v54 = vunpack.c.h.s8.bf16 %v422_v44  ;;  %v544_v55 = vunpack.c.h.s8.bf16 %v424_v45  ;;  %v452_v17 = vunpack.c.h.s8.bf16 %v380_v6  ;;  %v394_v30 = vld [vmem:[%s1985_s15 + $0xa8] sm:$0xff]  ;;  %v465_v32 = vunpack.c.h.s8.bf16 %v385_v24  ;;  %v393_v35 = vld [vmem:[%s1985_s15 + $0xa0] sm:$0xff] }
 0x144   : > { %v482_v39 = vunpack.c.h.s8.bf16 %v394_v30 }
 0x145   : > { %574 = vmatpush1.bf16.msra.mxu0 %v461_v59  ;;  %617 = vmatpush1.bf16.msra.mxu1 %v463_v60  ;;  %v541_v59 = vunpack.c.h.s8.bf16 %v421_v50  ;;  %v543_v60 = vunpack.c.h.s8.bf16 %v423_v51 }
 0x146   : > { %575 = vmatprep.subr.bf16.mxu0 %v470_v61  ;;  %618 = vmatprep.subr.bf16.mxu1 %v472_v62  ;;  %v550_v61 = vunpack.c.l.s8.bf16 %v430_v56  ;;  %v552_v62 = vunpack.c.l.s8.bf16 %v432_v57 }
 0x149   : > { %576 = vmatpush1.bf16.msra.mxu0 %v469_v1  ;;  %619 = vmatpush1.bf16.msra.mxu1 %v471_v2  ;;  %v549_v1 = vunpack.c.l.s8.bf16 %v429_v63  ;;  %v551_v2 = vunpack.c.l.s8.bf16 %v431_v0 }
 0x14a   : > { %577 = vmatprep.subr.bf16.mxu0 %v478_v3  ;;  %620 = vmatprep.subr.bf16.mxu1 %v480_v4  ;;  %v558_v3 = vunpack.c.h.s8.bf16 %v430_v56  ;;  %v560_v4 = vunpack.c.h.s8.bf16 %v432_v57 }
 0x14d   : > { %578 = vmatpush1.bf16.msra.mxu0 %v477_v7  ;;  %621 = vmatpush1.bf16.msra.mxu1 %v479_v8  ;;  %v557_v7 = vunpack.c.h.s8.bf16 %v429_v63  ;;  %v559_v8 = vunpack.c.h.s8.bf16 %v431_v0 }
 0x14e   : > { %579 = vmatprep.subr.bf16.mxu0 %v486_v9  ;;  %622 = vmatprep.subr.bf16.mxu1 %v488_v10  ;;  %v442_v9 = vunpack.c.l.s8.bf16 %v378_v5  ;;  %v444_v10 = vunpack.c.l.s8.bf16 %v380_v6 }
 0x151   : > { %580 = vmatpush1.bf16.msra.mxu0 %v485_v13  ;;  %623 = vmatpush1.bf16.msra.mxu1 %v487_v14  ;;  %v2044_v13 = vld [vmem:[#allocation2] sm:$0xff]  ;;  %v441_v14 = vunpack.c.l.s8.bf16 %v377_v11 }
 0x152   : > { %581 = vmatprep.subr.bf16.mxu0 %v494_v15  ;;  %624 = vmatprep.subr.bf16.mxu1 %v496_v16  ;;  %v443_v15 = vunpack.c.l.s8.bf16 %v379_v12  ;;  %v450_v16 = vunpack.c.h.s8.bf16 %v378_v5 }
 0x155   : > { %582 = vmatpush1.bf16.msra.mxu0 %v493_v19  ;;  %625 = vmatpush1.bf16.msra.mxu1 %v495_v20  ;;  %v388_v19 = vld [vmem:[%s1985_s15 + $0x78] sm:$0xff]  ;;  %v449_v20 = vunpack.c.h.s8.bf16 %v377_v11 }
 0x156   : > { %583 = vmatprep.subr.bf16.mxu0 %v502_v21  ;;  %626 = vmatprep.subr.bf16.mxu1 %v504_v22  ;;  %v451_v21 = vunpack.c.h.s8.bf16 %v379_v12  ;;  %v458_v22 = vunpack.c.l.s8.bf16 %v386_v18  ;;  %v460_v23 = vunpack.c.l.s8.bf16 %v388_v19 }
 0x159   : > { %584 = vmatpush1.bf16.msra.mxu0 %v501_v25  ;;  %627 = vmatpush1.bf16.msra.mxu1 %v503_v26  ;;  %v387_v25 = vld [vmem:[%s1985_s15 + $0x70] sm:$0xff]  ;;  %v457_v26 = vunpack.c.l.s8.bf16 %v385_v24 }
 0x15a   : > { %585 = vmatprep.subr.bf16.mxu0 %v510_v28  ;;  %628 = vmatprep.subr.bf16.mxu1 %v512_v29  ;;  %v459_v27 = vunpack.c.l.s8.bf16 %v387_v25  ;;  %v466_v28 = vunpack.c.h.s8.bf16 %v386_v18  ;;  %v468_v29 = vunpack.c.h.s8.bf16 %v388_v19 }
 0x15d   : > { %586 = vmatpush1.bf16.msra.mxu0 %v509_v33  ;;  %629 = vmatpush1.bf16.msra.mxu1 %v511_v34  ;;  %v467_v33 = vunpack.c.h.s8.bf16 %v387_v25  ;;  %v476_v34 = vunpack.c.l.s8.bf16 %v396_v31 }
 0x15e   : > { %587 = vmatprep.subr.bf16.mxu0 %v518_v36  ;;  %630 = vmatprep.subr.bf16.mxu1 %v520_v37  ;;  %v395_v36 = vld [vmem:[%s1985_s15 + $0xb0] sm:$0xff]  ;;  %v473_v37 = vunpack.c.l.s8.bf16 %v393_v35 }
 0x15f   : > { %v475_v38 = vunpack.c.l.s8.bf16 %v395_v36  ;;  %v483_v44 = vunpack.c.h.s8.bf16 %v395_v36 }
 0x161   : > { %588 = vmatpush1.bf16.msra.mxu0 %v517_v40  ;;  %631 = vmatpush1.bf16.msra.mxu1 %v519_v41  ;;  %v484_v40 = vunpack.c.h.s8.bf16 %v396_v31  ;;  %v402_v41 = vld [vmem:[%s1985_s15 + $0xe8] sm:$0xff] }
 0x162   : > { %589 = vmatprep.subr.bf16.mxu0 %v526_v42  ;;  %632 = vmatprep.subr.bf16.mxu1 %v528_v43  ;;  %v404_v42 = vld [vmem:[%s1985_s15 + $0xf8] sm:$0xff]  ;;  %v481_v43 = vunpack.c.h.s8.bf16 %v393_v35  ;;  %v490_v45 = vunpack.c.l.s8.bf16 %v402_v41  ;;  %v498_v51 = vunpack.c.h.s8.bf16 %v402_v41 }
 0x165   : > { %590 = vmatpush1.bf16.msra.mxu0 %v525_v46  ;;  %633 = vmatpush1.bf16.msra.mxu1 %v527_v47  ;;  %v492_v46 = vunpack.c.l.s8.bf16 %v404_v42  ;;  %v401_v47 = vld [vmem:[%s1985_s15 + $0xe0] sm:$0xff] }
 0x166   : > { %591 = vmatprep.subr.bf16.mxu0 %v534_v48  ;;  %634 = vmatprep.subr.bf16.mxu1 %v536_v49  ;;  %v403_v48 = vld [vmem:[%s1985_s15 + $0xf0] sm:$0xff]  ;;  %v489_v49 = vunpack.c.l.s8.bf16 %v401_v47 }
 0x167   : > { %v491_v50 = vunpack.c.l.s8.bf16 %v403_v48  ;;  %v499_v56 = vunpack.c.h.s8.bf16 %v403_v48 }
 0x169   : > { %592 = vmatpush1.bf16.msra.mxu0 %v533_v52  ;;  %635 = vmatpush1.bf16.msra.mxu1 %v535_v53  ;;  %v500_v52 = vunpack.c.h.s8.bf16 %v404_v42  ;;  %v410_v53 = vld [vmem:[%s1985_s15 + $0x128] sm:$0xff] }
 0x16a   : > { %593 = vmatprep.subr.bf16.mxu0 %v542_v54  ;;  %636 = vmatprep.subr.bf16.mxu1 %v544_v55  ;;  %v412_v54 = vld [vmem:[%s1985_s15 + $0x138] sm:$0xff]  ;;  %v497_v55 = vunpack.c.h.s8.bf16 %v401_v47  ;;  %v506_v57 = vunpack.c.l.s8.bf16 %v410_v53  ;;  %v514_v0 = vunpack.c.h.s8.bf16 %v410_v53 }
 0x16d   : > { %594 = vmatpush1.bf16.msra.mxu0 %v541_v59  ;;  %637 = vmatpush1.bf16.msra.mxu1 %v543_v60  ;;  %v508_v59 = vunpack.c.l.s8.bf16 %v412_v54  ;;  %v409_v60 = vld [vmem:[%s1985_s15 + $0x120] sm:$0xff] }
 0x16e   : > { %595 = vmatprep.subr.bf16.mxu0 %v550_v61  ;;  %638 = vmatprep.subr.bf16.mxu1 %v552_v62  ;;  %v411_v61 = vld [vmem:[%s1985_s15 + $0x130] sm:$0xff]  ;;  %v505_v62 = vunpack.c.l.s8.bf16 %v409_v60 }
 0x16f   : > { %v507_v63 = vunpack.c.l.s8.bf16 %v411_v61  ;;  %v515_v5 = vunpack.c.h.s8.bf16 %v411_v61 }
 0x171   : > { %596 = vmatpush1.bf16.msra.mxu0 %v549_v1  ;;  %639 = vmatpush1.bf16.msra.mxu1 %v551_v2  ;;  %v516_v1 = vunpack.c.h.s8.bf16 %v412_v54  ;;  %v418_v2 = vld [vmem:[%s1985_s15 + $0x168] sm:$0xff] }
 0x172   : > { %597 = vmatprep.subr.bf16.mxu0 %v558_v3  ;;  %640 = vmatprep.subr.bf16.mxu1 %v560_v4  ;;  %v420_v3 = vld [vmem:[%s1985_s15 + $0x178] sm:$0xff]  ;;  %v513_v4 = vunpack.c.h.s8.bf16 %v409_v60  ;;  %v522_v6 = vunpack.c.l.s8.bf16 %v418_v2  ;;  %v530_v12 = vunpack.c.h.s8.bf16 %v418_v2 }
 0x175   : > { %598 = vmatpush1.bf16.msra.mxu0 %v557_v7  ;;  %641 = vmatpush1.bf16.msra.mxu1 %v559_v8  ;;  %v524_v7 = vunpack.c.l.s8.bf16 %v420_v3  ;;  %v417_v8 = vld [vmem:[%s1985_s15 + $0x160] sm:$0xff] }
 0x176   : > { %653 = vmatprep.subr.bf16.mxu0 %v442_v9  ;;  %696 = vmatprep.subr.bf16.mxu1 %v444_v10  ;;  %v419_v9 = vld [vmem:[%s1985_s15 + $0x170] sm:$0xff]  ;;  %v521_v10 = vunpack.c.l.s8.bf16 %v417_v8 }
 0x177   : > { %v523_v11 = vunpack.c.l.s8.bf16 %v419_v9  ;;  %v531_v18 = vunpack.c.h.s8.bf16 %v419_v9 }
 0x178   : > { %600 = vmatmul.mubr.bf16.vlgmr.msra.gmra.mrb[0].mxu0 %v2044_v13  ;;  %643 = vmatmul.mubr.bf16.vlgmr.msra.gmra.mrb[0].mxu1 %v2044_v13 }
 0x179   : > { %654 = vmatpush1.bf16.msra.mxu0 %v441_v14  ;;  %697 = vmatpush1.bf16.msra.mxu1 %v443_v15  ;;  %v532_v14 = vunpack.c.h.s8.bf16 %v420_v3  ;;  %v426_v15 = vld [vmem:[%s1985_s15 + $0x1a8] sm:$0xff] }
 0x17a   : > { %655 = vmatprep.subr.bf16.mxu0 %v450_v16  ;;  %698 = vmatprep.subr.bf16.mxu1 %v452_v17  ;;  %v428_v16 = vld [vmem:[%s1985_s15 + $0x1b8] sm:$0xff]  ;;  %v529_v17 = vunpack.c.h.s8.bf16 %v417_v8  ;;  %v538_v19 = vunpack.c.l.s8.bf16 %v426_v15  ;;  %v546_v25 = vunpack.c.h.s8.bf16 %v426_v15 }
 0x17b   : > { %685 = vmatprep.mubr.bf16.mxu0 %v2014_v58  ;;  %728 = vmatprep.mubr.bf16.mxu1 %v2014_v58  ;;  %v474_v58 = vunpack.c.l.s8.bf16 %v394_v30 }
 0x17d   : > { %656 = vmatpush1.bf16.msra.mxu0 %v449_v20  ;;  %699 = vmatpush1.bf16.msra.mxu1 %v451_v21  ;;  %v540_v20 = vunpack.c.l.s8.bf16 %v428_v16  ;;  %v425_v21 = vld [vmem:[%s1985_s15 + $0x1a0] sm:$0xff] }
 0x17e   : > { %657 = vmatprep.subr.bf16.mxu0 %v458_v22  ;;  %700 = vmatprep.subr.bf16.mxu1 %v460_v23  ;;  %v427_v22 = vld [vmem:[%s1985_s15 + $0x1b0] sm:$0xff]  ;;  %v537_v23 = vunpack.c.l.s8.bf16 %v425_v21 }
 0x17f   : > { %v539_v24 = vunpack.c.l.s8.bf16 %v427_v22  ;;  %v547_v30 = vunpack.c.h.s8.bf16 %v427_v22 }
 0x181   : > { %658 = vmatpush1.bf16.msra.mxu0 %v457_v26  ;;  %701 = vmatpush1.bf16.msra.mxu1 %v459_v27  ;;  %v548_v26 = vunpack.c.h.s8.bf16 %v428_v16  ;;  %v434_v27 = vld [vmem:[%s1985_s15 + $0x1e8] sm:$0xff] }
 0x182   : > { %659 = vmatprep.subr.bf16.mxu0 %v466_v28  ;;  %702 = vmatprep.subr.bf16.mxu1 %v468_v29  ;;  %v436_v28 = vld [vmem:[%s1985_s15 + $0x1f8] sm:$0xff]  ;;  %v545_v29 = vunpack.c.h.s8.bf16 %v425_v21  ;;  %v554_v31 = vunpack.c.l.s8.bf16 %v434_v27  ;;  %v562_v36 = vunpack.c.h.s8.bf16 %v434_v27 }
 0x185   : > { %660 = vmatpush1.bf16.msra.mxu0 %v465_v32  ;;  %703 = vmatpush1.bf16.msra.mxu1 %v467_v33  ;;  %v556_v32 = vunpack.c.l.s8.bf16 %v436_v28  ;;  %v433_v33 = vld [vmem:[%s1985_s15 + $0x1e0] sm:$0xff] }
 0x186   : > { %661 = vmatprep.subr.bf16.mxu0 %v474_v58  ;;  %704 = vmatprep.subr.bf16.mxu1 %v476_v34  ;;  %v435_v58 = vld [vmem:[%s1985_s15 + $0x1f0] sm:$0xff]  ;;  %v553_v34 = vunpack.c.l.s8.bf16 %v433_v33 }
 0x187   : > { %v555_v35 = vunpack.c.l.s8.bf16 %v435_v58 }
 0x189   : > { %662 = vmatpush1.bf16.msra.mxu0 %v473_v37  ;;  %705 = vmatpush1.bf16.msra.mxu1 %v475_v38  ;;  %v564_v37 = vunpack.c.h.s8.bf16 %v436_v28  ;;  %v561_v38 = vunpack.c.h.s8.bf16 %v433_v33 }
 0x18a   : > { %663 = vmatprep.subr.bf16.mxu0 %v482_v39  ;;  %706 = vmatprep.subr.bf16.mxu1 %v484_v40  ;;  %v563_v39 = vunpack.c.h.s8.bf16 %v435_v58 }
 0x18d   : > { %664 = vmatpush1.bf16.msra.mxu0 %v481_v43  ;;  %707 = vmatpush1.bf16.msra.mxu1 %v483_v44 }
 0x18e   : > { %665 = vmatprep.subr.bf16.mxu0 %v490_v45  ;;  %708 = vmatprep.subr.bf16.mxu1 %v492_v46 }
 0x191   : > { %666 = vmatpush1.bf16.msra.mxu0 %v489_v49  ;;  %709 = vmatpush1.bf16.msra.mxu1 %v491_v50 }
 0x192   : > { %667 = vmatprep.subr.bf16.mxu0 %v498_v51  ;;  %710 = vmatprep.subr.bf16.mxu1 %v500_v52 }
 0x195   : > { %668 = vmatpush1.bf16.msra.mxu0 %v497_v55  ;;  %711 = vmatpush1.bf16.msra.mxu1 %v499_v56 }
 0x196   : > { %669 = vmatprep.subr.bf16.mxu0 %v506_v57  ;;  %712 = vmatprep.subr.bf16.mxu1 %v508_v59 }
 0x199   : > { %670 = vmatpush1.bf16.msra.mxu0 %v505_v62  ;;  %713 = vmatpush1.bf16.msra.mxu1 %v507_v63 }
 0x19a   : > { %671 = vmatprep.subr.bf16.mxu0 %v514_v0  ;;  %714 = vmatprep.subr.bf16.mxu1 %v516_v1 }
 0x19d   : > { %672 = vmatpush1.bf16.msra.mxu0 %v513_v4  ;;  %715 = vmatpush1.bf16.msra.mxu1 %v515_v5 }
 0x19e   : > { %673 = vmatprep.subr.bf16.mxu0 %v522_v6  ;;  %716 = vmatprep.subr.bf16.mxu1 %v524_v7 }
 0x1a1   : > { %674 = vmatpush1.bf16.msra.mxu0 %v521_v10  ;;  %717 = vmatpush1.bf16.msra.mxu1 %v523_v11 }
 0x1a2   : > { %675 = vmatprep.subr.bf16.mxu0 %v530_v12  ;;  %718 = vmatprep.subr.bf16.mxu1 %v532_v14 }
 0x1a5   : > { %676 = vmatpush1.bf16.msra.mxu0 %v529_v17  ;;  %719 = vmatpush1.bf16.msra.mxu1 %v531_v18 }
 0x1a6   : > { %677 = vmatprep.subr.bf16.mxu0 %v538_v19  ;;  %720 = vmatprep.subr.bf16.mxu1 %v540_v20 }
 0x1a9   : > { %678 = vmatpush1.bf16.msra.mxu0 %v537_v23  ;;  %721 = vmatpush1.bf16.msra.mxu1 %v539_v24 }
 0x1aa   : > { %679 = vmatprep.subr.bf16.mxu0 %v546_v25  ;;  %722 = vmatprep.subr.bf16.mxu1 %v548_v26 }
 0x1ad   : > { %680 = vmatpush1.bf16.msra.mxu0 %v545_v29  ;;  %723 = vmatpush1.bf16.msra.mxu1 %v547_v30 }
 0x1ae   : > { %681 = vmatprep.subr.bf16.mxu0 %v554_v31  ;;  %724 = vmatprep.subr.bf16.mxu1 %v556_v32 }
 0x1b1   : > { %682 = vmatpush1.bf16.msra.mxu0 %v553_v34  ;;  %725 = vmatpush1.bf16.msra.mxu1 %v555_v35 }
 0x1b2   : > { %683 = vmatprep.subr.bf16.mxu0 %v562_v36  ;;  %726 = vmatprep.subr.bf16.mxu1 %v564_v37 }
 0x1b5   : > { %684 = vmatpush1.bf16.msra.mxu0 %v561_v38  ;;  %727 = vmatpush1.bf16.msra.mxu1 %v563_v39 }
 0x1b8   : > { %686 = vmatmul.mubr.bf16.vlgmr.msra.gmra.mrb[4].mxu0 %v2044_v13  ;;  %729 = vmatmul.mubr.bf16.vlgmr.msra.gmra.mrb[4].mxu1 %v2044_v13 }
 0x1be   : > { %v2080_v48 = vpop.permute.xlu0 %743 }
 0x1c2   : > { %v2084_v51 = vpop.permute.xlu0 %748 }
 0x24b   : > { %v601_v40 = vpop.f32.mrb[0].mxu0  ;;  %v644_v41 = vpop.f32.mrb[0].mxu1 }
 0x24c   : > { %v603_v42 = vpop.f32.mrb[1].mxu0  ;;  %v646_v43 = vpop.f32.mrb[1].mxu1  ;;  %v751_v49 = vmul.f32 %v2080_v48, %v601_v40  ;;  %v753_v50 = vmul.f32 %v2080_v48, %v644_v41 }
 0x24d   : > { %v605_v44 = vpop.f32.mrb[2].mxu0  ;;  %v648_v45 = vpop.f32.mrb[2].mxu1  ;;  %v752_v52 = vmul.f32 %v2080_v48, %v603_v42  ;;  %v754_v13 = vmul.f32 %v2080_v48, %v646_v43 }
 0x24e   : > { %v607_v46 = vpop.f32.mrb[3].mxu0  ;;  %v650_v47 = vpop.f32.mrb[3].mxu1  ;;  %v1317_v53 = vmul.f32 -1.442695, %v751_v49  ;;  %v759_v54 = vmul.f32 %v2084_v51, %v605_v44  ;;  %v1319_v55 = vmul.f32 -1.442695, %v753_v50  ;;  %v761_v56 = vmul.f32 %v2084_v51, %v648_v45 }
 0x24f   : > { %v1318_v57 = vmul.f32 -1.442695, %v752_v52  ;;  %v760_v59 = vmul.f32 %v2084_v51, %v607_v46  ;;  %v1320_v60 = vmul.f32 -1.442695, %v754_v13  ;;  %v762_v61 = vmul.f32 %v2084_v51, %v650_v47 }
 0x250   : > { %1493 = vpow2.f32 %v1317_v53  ;;  %v1321_v62 = vmul.f32 -1.442695, %v759_v54  ;;  %v1323_v63 = vmul.f32 -1.442695, %v761_v56 }
 0x251   : > { %1495 = vpow2.f32 %v1319_v55  ;;  %v1322_v0 = vmul.f32 -1.442695, %v760_v59  ;;  %v1324_v1 = vmul.f32 -1.442695, %v762_v61 }
 0x252   : > { %1497 = vpow2.f32 %v1318_v57 }
 0x253   : > { %1499 = vpow2.f32 %v1320_v60 }
 0x254   : > { %1501 = vpow2.f32 %v1321_v62 }
 0x255   : > { %1503 = vpow2.f32 %v1323_v63 }
 0x256   : > { %1505 = vpow2.f32 %v1322_v0  ;;  %v842_v0 = vld [vmem:[#allocation4] sm:$0xff] }
 0x257   : > { %1507 = vpow2.f32 %v1324_v1  ;;  %v843_v1 = vld [vmem:[#allocation4 + $0x8] sm:$0xff] }
 0x25a   : > { %v1494_v2 = vpop.eup %1493 }
 0x25b   : > { %v1496_v3 = vpop.eup %1495  ;;  %v791_v6 = vadd.f32 1.0, %v1494_v2 }
 0x25c   : > { %v1498_v4 = vpop.eup %1497  ;;  %v793_v8 = vadd.f32 1.0, %v1496_v3 }
 0x25d   : > { %v1500_v5 = vpop.eup %1499  ;;  %v792_v10 = vadd.f32 1.0, %v1498_v4  ;;  %1509 = vrcp.f32 %v791_v6 }
 0x25e   : > { %v1502_v7 = vpop.eup %1501  ;;  %v794_v12 = vadd.f32 1.0, %v1500_v5  ;;  %1511 = vrcp.f32 %v793_v8 }
 0x25f   : > { %v1504_v9 = vpop.eup %1503  ;;  %v795_v15 = vadd.f32 1.0, %v1502_v7  ;;  %1513 = vrcp.f32 %v792_v10 }
 0x260   : > { %v1506_v11 = vpop.eup %1505  ;;  %v797_v16 = vadd.f32 1.0, %v1504_v9  ;;  %1515 = vrcp.f32 %v794_v12 }
 0x261   : > { %v1508_v14 = vpop.eup %1507  ;;  %v796_v17 = vadd.f32 1.0, %v1506_v11  ;;  %1517 = vrcp.f32 %v795_v15 }
 0x262   : > { %v798_v18 = vadd.f32 1.0, %v1508_v14  ;;  %1519 = vrcp.f32 %v797_v16 }
 0x263   : > { %1521 = vrcp.f32 %v796_v17 }
 0x264   : > { %1523 = vrcp.f32 %v798_v18 }
 0x267   : > { %v1510_v19 = vpop.eup %1509 }
 0x268   : > { %v1512_v20 = vpop.eup %1511  ;;  %v815_v27 = vmul.f32 %v1510_v19, %v751_v49 }
 0x269   : > { %v1514_v21 = vpop.eup %1513  ;;  %v817_v28 = vmul.f32 %v1512_v20, %v753_v50 }
 0x26a   : > { %v1516_v22 = vpop.eup %1515  ;;  %v816_v29 = vmul.f32 %v1514_v21, %v752_v52 }
 0x26b   : > { %v1518_v23 = vpop.eup %1517  ;;  %v818_v30 = vmul.f32 %v1516_v22, %v754_v13 }
 0x26c   : > { %v1520_v24 = vpop.eup %1519  ;;  %v819_v33 = vmul.f32 %v1518_v23, %v759_v54 }
 0x26d   : > { %v1522_v25 = vpop.eup %1521  ;;  %v821_v58 = vmul.f32 %v1520_v24, %v761_v56 }
 0x26e   : > { %v1524_v26 = vpop.eup %1523  ;;  %v820_v38 = vmul.f32 %v1522_v25, %v760_v59 }
 0x26f   : > { %v822_v39 = vmul.f32 %v1524_v26, %v762_v61 }
 0x28b   : > { %v687_v31 = vpop.f32.mrb[4].mxu0  ;;  %v730_v32 = vpop.f32.mrb[4].mxu1 }
 0x28c   : > { %v755_v34 = vmul.f32 %v2080_v48, %v687_v31  ;;  %v757_v35 = vmul.f32 %v2080_v48, %v730_v32  ;;  %v689_v36 = vpop.f32.mrb[5].mxu0  ;;  %v732_v37 = vpop.f32.mrb[5].mxu1 }
 0x28d   : > { %v756_v40 = vmul.f32 %v2080_v48, %v689_v36  ;;  %v758_v41 = vmul.f32 %v2080_v48, %v732_v37  ;;  %v691_v42 = vpop.f32.mrb[6].mxu0  ;;  %v734_v43 = vpop.f32.mrb[6].mxu1 }
 0x28e   : > { %v823_v44 = vmul.f32 %v815_v27, %v755_v34  ;;  %v825_v45 = vmul.f32 %v817_v28, %v757_v35  ;;  %v763_v46 = vmul.f32 %v2084_v51, %v691_v42  ;;  %v765_v47 = vmul.f32 %v2084_v51, %v734_v43  ;;  %v693_v49 = vpop.f32.mrb[7].mxu0  ;;  %v736_v50 = vpop.f32.mrb[7].mxu1 }
 0x28f   : > { %v824_v52 = vmul.f32 %v816_v29, %v756_v40  ;;  %v826_v13 = vmul.f32 %v818_v30, %v758_v41  ;;  %v764_v53 = vmul.f32 %v2084_v51, %v693_v49  ;;  %v766_v54 = vmul.f32 %v2084_v51, %v736_v50 }
 0x290   : > { %v827_v55 = vmul.f32 %v819_v33, %v763_v46  ;;  %v829_v56 = vmul.f32 %v821_v58, %v765_v47 }
 0x291   : > { %v828_v48 = vmul.f32 %v820_v38, %v764_v53  ;;  %v830_v57 = vmul.f32 %v822_v39, %v766_v54 }
 0x292   : > { %v831_v59 = vpack.c.bf16 %v827_v55, %v823_v44  ;;  %v833_v60 = vpack.c.bf16 %v829_v56, %v825_v45 }
 0x293   : > { %v832_v61 = vpack.c.bf16 %v828_v48, %v824_v52  ;;  %v834_v62 = vpack.c.bf16 %v830_v57, %v826_v13 }
 0x294   : > { %838 = vst [vmem:[%s837_s17] sm:$0xff] %v831_v59  ;;  %840 = vst [vmem:[%s837_s17 + $0x10] sm:$0xff] %v833_v60 }
 0x295   : > { %839 = vst [vmem:[%s837_s17 + $0x8] sm:$0xff] %v832_v61  ;;  %841 = vst [vmem:[%s837_s17 + $0x18] sm:$0xff] %v834_v62  ;;  %1716 = vmaxabs.init.bf16.vacc0 %v831_v59, %v832_v61 }
 0x297   : > { %1717 = vmaxabs.bf16.vacc0 %v833_v60, %v834_v62 }
 0x299   : > { %v1718_v63 = vmovacc.low.even.vacc0 }
 0x29b   : > { %851 = vmax.xlane.bf16.xlu1 %v1718_v63 }
 0x32c   : > { %v852_v51 = vpop.xlane.xlu1 %851 }
 0x32d   : > { %v853_v2 = vunpack.c.l.bf16 %v852_v51  ;;  %v854_v3 = vunpack.c.h.bf16 %v852_v51 }
 0x32f   : > { %v855_v4 = vmax.f32 %v842_v0, %v853_v2  ;;  %v856_v5 = vmax.f32 %v843_v1, %v854_v3 }
 0x331   : > { %858 = vst.msk [vmem:[#allocation4] sm:$0xff] %vm857_vm1, %v855_v4  ;;  %859 = vst.msk [vmem:[#allocation4 + $0x8] sm:$0xff] %vm857_vm1, %v856_v5 }
 0x332 PF: > { %p1327_p13 = scmp.ne.s32.totalorder %s1737_s19, 1 }
 0x333   : > { %v1759_v8 = vmov (!%p1327_p13), 0.0   ;;  %vm876_vm2 = vcmask (!%p1327_p13), 7168  }
 0x334   : > { %863 = sbr.rel (%p1327_p13) target bundleno = 842 (0x34a), region = 64  ;;  %864 = vst [vmem:[#allocation6] sm:$0xff] (!%p1327_p13), %v1759_v8  ;;  %865 = vst [vmem:[#allocation6 + $0x8] sm:$0xff] (!%p1327_p13), %v1759_v8 }
 0x335   : > { %866 = vst [vmem:[#allocation6 + $0x10] sm:$0xff] (!%p1327_p13), %v1759_v8  ;;  %867 = vst [vmem:[#allocation6 + $0x18] sm:$0xff] (!%p1327_p13), %v1759_v8 }
 0x338   : > { %v868_v6 = vld [vmem:[#allocation4] sm:$0xff] (!%p1327_p13)  ;;  %v869_v7 = vld [vmem:[#allocation4 + $0x8] sm:$0xff] (!%p1327_p13) }
 0x339   : > { %v870_v9 = vmax.f32 (!%p1327_p13), %v868_v6, 1e-05  ;;  %v871_v10 = vmax.f32 (!%p1327_p13), %v869_v7, 1e-05 }
 0x33b   : > { %1525 = vrcp.f32 %v870_v9 }
 0x33c   : > { %1527 = vrcp.f32 %v871_v10 }
 0x345   : > { %v1526_v11 = vpop.eup %1525 }
 0x346   : > { %v1528_v12 = vpop.eup %1527  ;;  %v873_v14 = vmul.f32 127.0, %v1526_v11 }
 0x347   : > { %v875_v15 = vmul.f32 127.0, %v1528_v12 }
 0x348   : > { %877 = vst.msk [vmem:[#allocation3] sm:$0xff] %vm876_vm2, %v873_v14 }
 0x349   : > { %878 = vst.msk [vmem:[#allocation3 + $0x8] sm:$0xff] %vm876_vm2, %v875_v15 }
 0x34a PF: > { %p1328_p1 = scmp.lt.s32.totalorder %s1737_s19, 1 }
 0x34b   : > { %v932_v17 = vld [vmem:[%s1992_s30 + $0x8] sm:$0xff] (!%p1328_p1)  ;;  %v1760_v18 = vmov (!%p1328_p1), 0   ;;  %v931_v22 = vld [vmem:[%s1992_s30] sm:$0xff] (!%p1328_p1)  ;;  %v934_v27 = vld [vmem:[%s1992_s30 + $0x18] sm:$0xff] (!%p1328_p1)  ;;  %s1329_s6 = sadd.s32 (!%p1328_p1), 4294967295, %s1737_s19 }
 0x34c   : > { %882 = sbr.rel (%p1328_p1) target bundleno = 1207 (0x4b7), region = 68  ;;  %1529 = vset.pattern.permute.xlu0 (!%p1328_p1), %v1760_v18  ;;  %v964_v19 = vunpack.c.l.s8.bf16 (!%p1328_p1), %v932_v17  ;;  %v966_v20 = vunpack.c.h.s8.bf16 (!%p1328_p1), %v932_v17  ;;  %v948_v21 = vld [vmem:[%s1992_s30 + $0x88] sm:$0xff] (!%p1328_p1)  ;;  %v947_v23 = vld [vmem:[%s1992_s30 + $0x80] sm:$0xff] (!%p1328_p1)  ;;  %v963_v26 = vunpack.c.l.s8.bf16 (!%p1328_p1), %v931_v22  ;;  %v950_v30 = vld [vmem:[%s1992_s30 + $0x98] sm:$0xff] (!%p1328_p1)  ;;  %v965_v31 = vunpack.c.h.s8.bf16 (!%p1328_p1), %v931_v22  ;;  %s1344_s7 = sshll.u32 (!%p1328_p1), %s1329_s6, 5 }
 0x34d   : > { %v996_v24 = vunpack.c.l.s8.bf16 (!%p1328_p1), %v948_v21  ;;  %v998_v25 = vunpack.c.h.s8.bf16 (!%p1328_p1), %v948_v21  ;;  %v995_v29 = vunpack.c.l.s8.bf16 (!%p1328_p1), %v947_v23  ;;  %v997_v32 = vunpack.c.h.s8.bf16 (!%p1328_p1), %v947_v23  ;;  %v933_v58 = vld [vmem:[%s1992_s30 + $0x10] sm:$0xff] (!%p1328_p1)  ;;  %v936_v40 = vld [vmem:[%s1992_s30 + $0x28] sm:$0xff] (!%p1328_p1)  ;;  %v935_v45 = vld [vmem:[%s1992_s30 + $0x20] sm:$0xff] (!%p1328_p1)  ;;  %s886_s8 = scalar_lea.vmem (!%p1328_p1), [#allocation5], %s1344_s7 }
 0x34e   : > { %1031 = vmatprep.subr.bf16.mxu1 (!%p1328_p1), %v964_v19  ;;  %v968_v33 = vunpack.c.l.s8.bf16 (!%p1328_p1), %v934_v27  ;;  %v1000_v34 = vunpack.c.l.s8.bf16 (!%p1328_p1), %v950_v30  ;;  %v949_v35 = vld [vmem:[%s1992_s30 + $0x90] sm:$0xff] (!%p1328_p1)  ;;  %v967_v36 = vunpack.c.l.s8.bf16 (!%p1328_p1), %v933_v58  ;;  %v970_v38 = vunpack.c.h.s8.bf16 (!%p1328_p1), %v934_v27  ;;  %v952_v41 = vld [vmem:[%s1992_s30 + $0xa8] sm:$0xff] (!%p1328_p1)  ;;  %v951_v47 = vld [vmem:[%s1992_s30 + $0xa0] sm:$0xff] (!%p1328_p1) }
 0x34f   : > { %v899_v16 = vld [vmem:[#allocation3] sm:$0xff] (!%p1328_p1)  ;;  %1074 = vmatprep.subr.bf16.mxu0 (!%p1328_p1), %v996_v24  ;;  %1032 = vmatpush1.bf16.msra.mxu1 (!%p1328_p1), %v963_v26  ;;  %v999_v37 = vunpack.c.l.s8.bf16 (!%p1328_p1), %v949_v35  ;;  %v1002_v39 = vunpack.c.h.s8.bf16 (!%p1328_p1), %v950_v30  ;;  %v969_v42 = vunpack.c.h.s8.bf16 (!%p1328_p1), %v933_v58  ;;  %v1001_v43 = vunpack.c.h.s8.bf16 (!%p1328_p1), %v949_v35  ;;  %v938_v53 = vld [vmem:[%s1992_s30 + $0x38] sm:$0xff] (!%p1328_p1)  ;;  %v940_v1 = vld [vmem:[%s1992_s30 + $0x48] sm:$0xff] (!%p1328_p1) }
 0x350   : > { %903 = vperm.xlu0 (!%p1328_p1), %1529, %v899_v16   ;;  %v900_v28 = vld [vmem:[#allocation3 + $0x8] sm:$0xff] (!%p1328_p1)  ;;  %1075 = vmatpush1.bf16.msra.mxu0 (!%p1328_p1), %v995_v29  ;;  %v972_v44 = vunpack.c.l.s8.bf16 (!%p1328_p1), %v936_v40  ;;  %v1004_v46 = vunpack.c.l.s8.bf16 (!%p1328_p1), %v952_v41  ;;  %v971_v49 = vunpack.c.l.s8.bf16 (!%p1328_p1), %v935_v45  ;;  %v1003_v50 = vunpack.c.l.s8.bf16 (!%p1328_p1), %v951_v47  ;;  %v937_v57 = vld [vmem:[%s1992_s30 + $0x30] sm:$0xff] (!%p1328_p1)  ;;  %v956_v51 = vld [vmem:[%s1992_s30 + $0xc8] sm:$0xff] (!%p1328_p1) }
 0x351   : > { %1033 = vmatprep.subr.bf16.mxu1 (!%p1328_p1), %v966_v20  ;;  %1076 = vmatprep.subr.bf16.mxu0 (!%p1328_p1), %v998_v25  ;;  %v974_v52 = vunpack.c.h.s8.bf16 (!%p1328_p1), %v936_v40  ;;  %v1006_v13 = vunpack.c.h.s8.bf16 (!%p1328_p1), %v952_v41  ;;  %v954_v54 = vld [vmem:[%s1992_s30 + $0xb8] sm:$0xff] (!%p1328_p1)  ;;  %v973_v55 = vunpack.c.h.s8.bf16 (!%p1328_p1), %v935_v45  ;;  %v1005_v56 = vunpack.c.h.s8.bf16 (!%p1328_p1), %v951_v47  ;;  %v953_v60 = vld [vmem:[%s1992_s30 + $0xb0] sm:$0xff] (!%p1328_p1)  ;;  %v939_v5 = vld [vmem:[%s1992_s30 + $0x40] sm:$0xff] (!%p1328_p1) }
 0x352   : > { %v976_v48 = vunpack.c.l.s8.bf16 (!%p1328_p1), %v938_v53  ;;  %v1008_v59 = vunpack.c.l.s8.bf16 (!%p1328_p1), %v954_v54  ;;  %v975_v61 = vunpack.c.l.s8.bf16 (!%p1328_p1), %v937_v57  ;;  %v1007_v62 = vunpack.c.l.s8.bf16 (!%p1328_p1), %v953_v60  ;;  %v955_v7 = vld [vmem:[%s1992_s30 + $0xc0] sm:$0xff] (!%p1328_p1)  ;;  %v942_v12 = vld [vmem:[%s1992_s30 + $0x58] sm:$0xff] (!%p1328_p1)  ;;  %v941_v18 = vld [vmem:[%s1992_s30 + $0x50] sm:$0xff] (!%p1328_p1) }
 0x353   : > { %1034 = vmatpush1.bf16.msra.mxu1 %v965_v31  ;;  %v978_v63 = vunpack.c.h.s8.bf16 %v938_v53  ;;  %v1010_v0 = vunpack.c.h.s8.bf16 %v954_v54  ;;  %v977_v2 = vunpack.c.h.s8.bf16 %v937_v57  ;;  %v1009_v3 = vunpack.c.h.s8.bf16 %v953_v60  ;;  %v958_v14 = vld [vmem:[%s1992_s30 + $0xd8] sm:$0xff]  ;;  %v957_v20 = vld [vmem:[%s1992_s30 + $0xd0] sm:$0xff]  ;;  %v944_v25 = vld [vmem:[%s1992_s30 + $0x68] sm:$0xff] }
 0x354   : > { %908 = vperm.xlu0 %1529, %v900_v28   ;;  %1077 = vmatpush1.bf16.msra.mxu0 %v997_v32  ;;  %v980_v4 = vunpack.c.l.s8.bf16 %v940_v1  ;;  %v1012_v6 = vunpack.c.l.s8.bf16 %v956_v51  ;;  %v979_v8 = vunpack.c.l.s8.bf16 %v939_v5  ;;  %v1011_v9 = vunpack.c.l.s8.bf16 %v955_v7  ;;  %v960_v26 = vld [vmem:[%s1992_s30 + $0xe8] sm:$0xff]  ;;  %v943_v30 = vld [vmem:[%s1992_s30 + $0x60] sm:$0xff]  ;;  %v945_v41 = vld [vmem:[%s1992_s30 + $0x70] sm:$0xff] }
 0x355   : > { %1035 = vmatprep.subr.bf16.mxu1 %v968_v33  ;;  %1078 = vmatprep.subr.bf16.mxu0 %v1000_v34  ;;  %v982_v10 = vunpack.c.h.s8.bf16 %v940_v1  ;;  %v1014_v11 = vunpack.c.h.s8.bf16 %v956_v51  ;;  %v981_v15 = vunpack.c.h.s8.bf16 %v939_v5  ;;  %v1013_v16 = vunpack.c.h.s8.bf16 %v955_v7  ;;  %v959_v32 = vld [vmem:[%s1992_s30 + $0xe0] sm:$0xff]  ;;  %v888_v53 = vld [vmem:[%s886_s8 + $0x8] sm:$0xff]  ;;  %v890_v54 = vld [vmem:[%s886_s8 + $0x18] sm:$0xff] }
 0x356   : > { %v984_v17 = vunpack.c.l.s8.bf16 %v942_v12  ;;  %v1016_v19 = vunpack.c.l.s8.bf16 %v958_v14  ;;  %v983_v21 = vunpack.c.l.s8.bf16 %v941_v18  ;;  %v1015_v22 = vunpack.c.l.s8.bf16 %v957_v20 }
 0x357   : > { %1036 = vmatpush1.bf16.msra.mxu1 %v967_v36  ;;  %v986_v23 = vunpack.c.h.s8.bf16 %v942_v12  ;;  %v1018_v24 = vunpack.c.h.s8.bf16 %v958_v14  ;;  %v985_v27 = vunpack.c.h.s8.bf16 %v941_v18  ;;  %v1017_v28 = vunpack.c.h.s8.bf16 %v957_v20  ;;  %v946_v36 = vld [vmem:[%s1992_s30 + $0x78] sm:$0xff] }
 0x358   : > { %1079 = vmatpush1.bf16.msra.mxu0 %v999_v37  ;;  %1037 = vmatprep.subr.bf16.mxu1 %v970_v38  ;;  %v988_v29 = vunpack.c.l.s8.bf16 %v944_v25  ;;  %v1020_v31 = vunpack.c.l.s8.bf16 %v960_v26  ;;  %v987_v33 = vunpack.c.l.s8.bf16 %v943_v30  ;;  %v1019_v58 = vunpack.c.l.s8.bf16 %v959_v32  ;;  %v962_v37 = vld [vmem:[%s1992_s30 + $0xf8] sm:$0xff] }
 0x359   : > { %1080 = vmatprep.subr.bf16.mxu0 %v1002_v39  ;;  %v990_v34 = vunpack.c.h.s8.bf16 %v944_v25  ;;  %v1022_v35 = vunpack.c.h.s8.bf16 %v960_v26  ;;  %v989_v38 = vunpack.c.h.s8.bf16 %v943_v30  ;;  %v1021_v39 = vunpack.c.h.s8.bf16 %v959_v32  ;;  %v1028_v26 = vld [vmem:[#allocation6 + $0x8] sm:$0xff]  ;;  %v1029_v30 = vld [vmem:[#allocation6 + $0x10] sm:$0xff] }
 0x35a   : > { %v992_v40 = vunpack.c.l.s8.bf16 %v946_v36  ;;  %v1026_v47 = vunpack.c.h.s8.bf16 %v962_v37  ;;  %v894_v57 = vunpack.c.l.bf16 %v890_v54 }
 0x35b   : > { %1038 = vmatpush1.bf16.msra.mxu1 %v969_v42  ;;  %v1024_v42 = vunpack.c.l.s8.bf16 %v962_v37 }
 0x35c   : > { %1081 = vmatpush1.bf16.msra.mxu0 %v1001_v43  ;;  %1039 = vmatprep.subr.bf16.mxu1 %v972_v44  ;;  %v961_v43 = vld [vmem:[%s1992_s30 + $0xf0] sm:$0xff]  ;;  %v991_v44 = vunpack.c.l.s8.bf16 %v945_v41 }
 0x35d   : > { %1082 = vmatprep.subr.bf16.mxu0 %v1004_v46  ;;  %v1023_v45 = vunpack.c.l.s8.bf16 %v961_v43  ;;  %v994_v46 = vunpack.c.h.s8.bf16 %v946_v36 }
 0x35f   : > { %1040 = vmatpush1.bf16.msra.mxu1 %v971_v49  ;;  %v993_v49 = vunpack.c.h.s8.bf16 %v945_v41 }
 0x360   : > { %1083 = vmatpush1.bf16.msra.mxu0 %v1003_v50  ;;  %1041 = vmatprep.subr.bf16.mxu1 %v974_v52  ;;  %v1025_v50 = vunpack.c.h.s8.bf16 %v961_v43  ;;  %v887_v52 = vld [vmem:[%s886_s8] sm:$0xff] }
 0x361   : > { %1084 = vmatprep.subr.bf16.mxu0 %v1006_v13  ;;  %v889_v13 = vld [vmem:[%s886_s8 + $0x10] sm:$0xff]  ;;  %v895_v60 = vunpack.c.h.bf16 %v887_v52 }
 0x363   : > { %1042 = vmatpush1.bf16.msra.mxu1 %v973_v55  ;;  %v891_v55 = vunpack.c.l.bf16 %v887_v52 }
 0x364   : > { %1085 = vmatpush1.bf16.msra.mxu0 %v1005_v56  ;;  %1043 = vmatprep.subr.bf16.mxu1 %v976_v48  ;;  %v893_v56 = vunpack.c.l.bf16 %v889_v13  ;;  %v892_v48 = vunpack.c.l.bf16 %v888_v53 }
 0x365   : > { %1086 = vmatprep.subr.bf16.mxu0 %v1008_v59 }
 0x367   : > { %1044 = vmatpush1.bf16.msra.mxu1 %v975_v61  ;;  %v897_v61 = vunpack.c.h.bf16 %v889_v13 }
 0x368   : > { %1087 = vmatpush1.bf16.msra.mxu0 %v1007_v62  ;;  %1045 = vmatprep.subr.bf16.mxu1 %v978_v63  ;;  %v896_v62 = vunpack.c.h.bf16 %v888_v53  ;;  %v898_v63 = vunpack.c.h.bf16 %v890_v54 }
 0x369   : > { %1088 = vmatprep.subr.bf16.mxu0 %v1010_v0 }
 0x36b   : > { %1046 = vmatpush1.bf16.msra.mxu1 %v977_v2 }
 0x36c   : > { %1089 = vmatpush1.bf16.msra.mxu0 %v1009_v3  ;;  %1047 = vmatprep.subr.bf16.mxu1 %v980_v4 }
 0x36d   : > { %1090 = vmatprep.subr.bf16.mxu0 %v1012_v6 }
 0x36f   : > { %1048 = vmatpush1.bf16.msra.mxu1 %v979_v8 }
 0x370   : > { %1091 = vmatpush1.bf16.msra.mxu0 %v1011_v9  ;;  %1049 = vmatprep.subr.bf16.mxu1 %v982_v10 }
 0x371   : > { %1092 = vmatprep.subr.bf16.mxu0 %v1014_v11 }
 0x373   : > { %1050 = vmatpush1.bf16.msra.mxu1 %v981_v15 }
 0x374   : > { %1093 = vmatpush1.bf16.msra.mxu0 %v1013_v16  ;;  %1051 = vmatprep.subr.bf16.mxu1 %v984_v17 }
 0x375   : > { %1094 = vmatprep.subr.bf16.mxu0 %v1016_v19 }
 0x377   : > { %1052 = vmatpush1.bf16.msra.mxu1 %v983_v21 }
 0x378   : > { %1095 = vmatpush1.bf16.msra.mxu0 %v1015_v22  ;;  %1053 = vmatprep.subr.bf16.mxu1 %v986_v23  ;;  %v1027_v22 = vld [vmem:[#allocation6] sm:$0xff] }
 0x379   : > { %1096 = vmatprep.subr.bf16.mxu0 %v1018_v24 }
 0x37b   : > { %1054 = vmatpush1.bf16.msra.mxu1 %v985_v27 }
 0x37c   : > { %1097 = vmatpush1.bf16.msra.mxu0 %v1017_v28  ;;  %1055 = vmatprep.subr.bf16.mxu1 %v988_v29 }
 0x37d   : > { %1098 = vmatprep.subr.bf16.mxu0 %v1020_v31 }
 0x37f   : > { %1056 = vmatpush1.bf16.msra.mxu1 %v987_v33 }
 0x380   : > { %1099 = vmatpush1.bf16.msra.mxu0 %v1019_v58  ;;  %1057 = vmatprep.subr.bf16.mxu1 %v990_v34  ;;  %v1030_v34 = vld [vmem:[#allocation6 + $0x18] sm:$0xff] }
 0x381   : > { %1100 = vmatprep.subr.bf16.mxu0 %v1022_v35 }
 0x383   : > { %1058 = vmatpush1.bf16.msra.mxu1 %v989_v38 }
 0x384   : > { %1101 = vmatpush1.bf16.msra.mxu0 %v1021_v39  ;;  %1059 = vmatprep.subr.bf16.mxu1 %v992_v40 }
 0x385   : > { %1102 = vmatprep.subr.bf16.mxu0 %v1024_v42 }
 0x387   : > { %1060 = vmatpush1.bf16.msra.mxu1 %v991_v44 }
 0x388   : > { %1103 = vmatpush1.bf16.msra.mxu0 %v1023_v45  ;;  %1061 = vmatprep.subr.bf16.mxu1 %v994_v46 }
 0x389   : > { %1104 = vmatprep.subr.bf16.mxu0 %v1026_v47 }
 0x38b   : > { %1062 = vmatpush1.bf16.msra.mxu1 %v993_v49 }
 0x38c   : > { %1105 = vmatpush1.bf16.msra.mxu0 %v1025_v50 }
 0x3cf   : > { %v904_v59 = vpop.permute.xlu0 %903 }
 0x3d0   : > { %v911_v0 = vmul.f32 %v904_v59, %v891_v55  ;;  %v913_v1 = vmul.f32 %v904_v59, %v893_v56  ;;  %v912_v51 = vmul.f32 %v904_v59, %v892_v48  ;;  %v914_v2 = vmul.f32 %v904_v59, %v894_v57 }
 0x3d2   : > { %v1356_v8 = vround.rtne.f32 %v912_v51  ;;  %v1358_v9 = vround.rtne.f32 %v914_v2  ;;  %v1355_v10 = vround.rtne.f32 %v911_v0  ;;  %v1357_v11 = vround.rtne.f32 %v913_v1 }
 0x3d3   : > { %v909_v3 = vpop.permute.xlu0 %908 }
 0x3d4   : > { %v915_v4 = vmul.f32 %v909_v3, %v895_v60  ;;  %v917_v5 = vmul.f32 %v909_v3, %v897_v61  ;;  %v916_v6 = vmul.f32 %v909_v3, %v896_v62  ;;  %v918_v7 = vmul.f32 %v909_v3, %v898_v63 }
 0x3d6   : > { %v1359_v12 = vround.rtne.f32 %v915_v4  ;;  %v1361_v14 = vround.rtne.f32 %v917_v5  ;;  %v1360_v15 = vround.rtne.f32 %v916_v6  ;;  %v1362_v16 = vround.rtne.f32 %v918_v7 }
 0x3d8   : > { %v928_v17 = vpack.c.bf16 %v1360_v15, %v1356_v8  ;;  %v930_v18 = vpack.c.bf16 %v1362_v16, %v1358_v9  ;;  %v927_v19 = vpack.c.bf16 %v1359_v12, %v1355_v10  ;;  %v929_v20 = vpack.c.bf16 %v1361_v14, %v1357_v11 }
 0x3da   : > { %1063 = vmatprep.mubr.bf16.mxu1 %v928_v17  ;;  %1106 = vmatprep.mubr.bf16.mxu0 %v930_v18 }
 0x3db   : > { %1064 = vmatmul.mubr.bf16.vlgmr.msra.gmra.mrb[0].mxu1 %v927_v19  ;;  %1107 = vmatmul.mubr.bf16.vlgmr.msra.gmra.mrb[0].mxu0 %v929_v20 }
 0x4ae   : > { %v1065_v21 = vpop.f32.mrb[0].mxu1  ;;  %v1108_v23 = vpop.f32.mrb[0].mxu0 }
 0x4af   : > { %v1109_v24 = vadd.f32 %v1108_v23, %v1065_v21  ;;  %v1067_v25 = vpop.f32.mrb[1].mxu1  ;;  %v1110_v27 = vpop.f32.mrb[1].mxu0 }
 0x4b0   : > { %v1111_v28 = vadd.f32 %v1110_v27, %v1067_v25  ;;  %v1069_v29 = vpop.f32.mrb[2].mxu1  ;;  %v1112_v31 = vpop.f32.mrb[2].mxu0 }
 0x4b1   : > { %v1117_v32 = vadd.f32 %v1109_v24, %v1027_v22  ;;  %v1113_v33 = vadd.f32 %v1112_v31, %v1069_v29  ;;  %v1071_v58 = vpop.f32.mrb[3].mxu1  ;;  %v1114_v35 = vpop.f32.mrb[3].mxu0 }
 0x4b2   : > { %v1118_v36 = vadd.f32 %v1111_v28, %v1028_v26  ;;  %v1115_v37 = vadd.f32 %v1114_v35, %v1071_v58 }
 0x4b3   : > { %1121 = vst [vmem:[#allocation6] sm:$0xff] %v1117_v32  ;;  %v1119_v38 = vadd.f32 %v1113_v33, %v1029_v30 }
 0x4b4   : > { %1122 = vst [vmem:[#allocation6 + $0x8] sm:$0xff] %v1118_v36  ;;  %v1120_v39 = vadd.f32 %v1115_v37, %v1030_v34 }
 0x4b5   : > { %1123 = vst [vmem:[#allocation6 + $0x10] sm:$0xff] %v1119_v38 }
 0x4b6   : > { %1124 = vst [vmem:[#allocation6 + $0x18] sm:$0xff] %v1120_v39 }
 0x4b7 PF: > { %1127 = sbr.rel (%p1327_p13) target bundleno = 1355 (0x54b), region = 72  ;;  %s1333_s9 = sld [smem:[#allocation7 + $0x1]] (!%p1327_p13)  ;;  %v1761_v40 = vmov (!%p1327_p13), 0   ;;  %v1128_v41 = vld [vmem:[#allocation4] sm:$0xff] (!%p1327_p13)  ;;  %v1129_v42 = vld [vmem:[#allocation4 + $0x8] sm:$0xff] (!%p1327_p13) }
 0x4b8   : > { %1530 = vset.pattern.permute.xlu0 (!%p1327_p13), %v1761_v40  ;;  %v1130_v43 = vmax.f32 (!%p1327_p13), %v1128_v41, 1e-05  ;;  %v1131_v44 = vmax.f32 (!%p1327_p13), %v1129_v42, 1e-05 }
 0x4ba   : > { %v1139_v49 = vld [vmem:[#allocation6] sm:$0xff] (!%p1327_p13) }
 0x4bb   : > { %v1140_v50 = vld [vmem:[#allocation6 + $0x8] sm:$0xff] (!%p1327_p13) }
 0x4bc   : > { %v1141_v54 = vld [vmem:[#allocation6 + $0x10] sm:$0xff] (!%p1327_p13) }
 0x4bd   : > { %s1135_s10 = smul.f32 (!%p1327_p13), 0.007874016, %s1333_s9  ;;  %v1142_v55 = vld [vmem:[#allocation6 + $0x18] sm:$0xff] (!%p1327_p13) }
 0x4bf   : > { %v1136_v45 = vstv %s1135_s10 }
 0x4c0   : > { %v1137_v46 = vmul.f32 %v1136_v45, %v1130_v43  ;;  %v1138_v47 = vmul.f32 %v1136_v45, %v1131_v44 }
 0x4c2   : > { %1145 = vperm.xlu0 %1530, %v1137_v46  }
 0x4c6   : > { %1150 = vperm.xlu0 %1530, %v1138_v47  }
 0x541   : > { %v1146_v52 = vpop.permute.xlu0 %1145 }
 0x542   : > { %v1153_v13 = vmul.f32 %v1146_v52, %v1139_v49  ;;  %v1154_v53 = vmul.f32 %v1146_v52, %v1140_v50 }
 0x544   : > { %v1345_v56 = vpack.c.bf16 %v1154_v53, %v1153_v13 }
 0x545   : > { %v1151_v48 = vpop.permute.xlu0 %1150 }
 0x546   : > { %1169 = vst [vmem:[#allocation15] sm:$0xff] %v1345_v56  ;;  %v1155_v57 = vmul.f32 %v1151_v48, %v1141_v54  ;;  %v1156_v59 = vmul.f32 %v1151_v48, %v1142_v55 }
 0x548   : > { %v1346_v60 = vpack.c.bf16 %v1156_v59, %v1155_v57 }
 0x54a   : > { %1170 = vst [vmem:[#allocation15 + $0x8] sm:$0xff] %v1346_v60 }
 0x54b PF: > { %p1398_p4 = scmp.eq.s32.totalorder %s1868_s23, 1  ;;  %s1762_s19 = smov [#allocation15]  }
 0x54c   : > { %s1181_s11 = sshll.u32 %s1762_s19, 4  ;;  %s1182_s11 = int_to_ptr.vmem [resolvable:$true] %s1181_s11 }
 0x54d   : > { %s1632_s12 = scalar_lea.vmem %s1182_s11, 256  ;;  %p1639_p0 = scmp.lt.s32.totalorder %s1182_s11, %s1182_s11 }
 0x54e   : > { %p1633_p12 = scmp.ne.s32.totalorder %s1182_s11, %s1632_s12  ;;  %p1640_p7 = scmp.lt.s32.totalorder %s1632_s12, %s1632_s12 }
 0x550   : > { %p1634_p8 = pnand %p1633_p12, %p1398_p4  ;;  %p1641_p10 = por %p1640_p7, %p1639_p0 }
 0x552   : > { %p1635_p2 = pneg %p1634_p8 }
 0x554   : > { %p1642_p5 = pnand %p1641_p10, %p1635_p2 }
 0x556   : > { %1645 = shalt.err (!%p1642_p5)
}
 0x557   : > { %s1646_s13 = scalar_lea.hbm %s2186_s4, 256 }
 0x558   : > { %p1647_p6 = scmp.ne.s32.totalorder %s2186_s4, %s1646_s13  ;;  %p1652_p3 = scmp.lt.u32.totalorder %s1646_s13, %s2186_s4 }
 0x55a   : > { %p1648_p9 = pnand %p1647_p6, %p1398_p4 }
 0x55c   : > { %p1649_p11 = pneg %p1648_p9 }
 0x55e   : > { %p1654_p13 = pnand %p1652_p3, %p1649_p11 }
 0x560   : > { %1657 = shalt.err (!%p1654_p13)
}
 0x561   : > { %s1763_s30 = smov 128   ;;  %s1764_s24 = smov 8  }
 0x562   : > { %1376 = dma.vmem_to_hbm [thread:$0]  (%p1398_p4), %s1182_s11, 256, %s2186_s4, [#allocation9], %s1763_s30, %s1763_s30, %s1764_s24  }
 0x563   : > { %1711 = dma.done.wait (%p1398_p4), [#allocation9], 256  }
 0x564   : > { %1713 = vsyncadd (%p1398_p4), [#allocation9], 4294967040 }
 0x565 PF: > { %s20_s21 = sadd.s32 1, %s1745_s21   ;;  %s2210_s15 = smov %s1725_s16 }
 0x566   : > { %p17_p1 = scmp.ge.s32.totalorder %s20_s21, 4   ;;  %s2167_s16 = smov 0  }
 0x567   : > { %s2211_s17 = smov %s1733_s18  ;;  %s2172_s18 = smov 0  }
 0x568   : > { %s2212_s19 = smov %s1741_s20  ;;  %s2213_s20 = smov %s2215_s22 }
 0x569   :  { %19 = sbr.rel (!%p17_p1) target bundleno = 8 (0x8), region = 118 }
 0x570   :  { %1197 = vsyncpa [#allocation8], 1 }
 0x571   :  { %1199 = vsyncpa [#allocation8 + $0x1], 1 }
 0x572   :  { %1200 = vsyncpa [#allocation13], 1 }
 0x573   :  { %1202 = vsyncpa [#allocation13 + $0x1], 1 }
 0x574   :  { %1203 = vsyncpa [#allocation9], 1 }
 0x575   :  { %1205 = vsyncpa [#allocation9 + $0x1], 1 }
 0x576   :  { %1206 = vsyncpa [#allocation10], 1 }
 0x577   :  { %1208 = vsyncpa [#allocation10 + $0x1], 1 }

</bundles_post_ra>
